<compile_context>
chip_gen: v7x
topology: tpu7x:2x2x1
jax: 0.10.0
libtpu: 0.0.40
codegen_flags: <defaults>
</compile_context>

<pallas_src>
import functools

import jax
import jax.numpy as jnp
from jax.experimental import pallas as pl
from jax.experimental.pallas import tpu as pltpu


def _round_up(x, m):
    return (x + m - 1) // m * m


# --------------------------------------------------------------------------
# Pallas kernel: full forward for one batch tile.
#   x_ref  : (TN, H, W, C)   bf16  NHWC activations (streamed per grid step)
#   w1_ref : (C, 128)        bf16  1x1 conv weight, avg-pool 1/25 folded in
#   s1/b1  : (1, 128)        f32   folded BN1 scale / bias
#   w2_ref : (4, 128, 768)   bf16  2x2 conv weight, one slab per position
#                                  p = di*2 + dj
#   s2/b2  : (1, 768)        f32   folded BN2 scale / bias
#   wl_ref : (768, NOUT)     bf16  classifier weight, NOUT = n_classes padded
#                                  up to a multiple of 128 (lane-dense out)
#   bl_ref : (1, NOUT)       f32
#   out_ref: (TN, NOUT)      f32
# --------------------------------------------------------------------------
def _aux_head_kernel(x_ref, w1_ref, s1_ref, b1_ref, w2_ref, s2_ref, b2_ref,
                     wl_ref, bl_ref, out_ref, *, stride):
    tn = out_ref.shape[0]

    # ReLU + 5x5 average pool (the /25 is folded into w1).  Elementwise math
    # stays in f32; only matmul operands are cast to bf16.
    x = jnp.maximum(x_ref[...].astype(jnp.float32), 0.0)
    pooled = []
    for di in range(2):
        for dj in range(2):
            win = x[:, di * stride:di * stride + 5,
                       dj * stride:dj * stride + 5, :]        # (TN, 5, 5, C)
            pooled.append(jnp.sum(win, axis=(1, 2)))          # (TN, C)
    # Stack the 4 positions along the row (sublane) axis -> one MXU pass for
    # the 1x1 conv instead of four tiny ones.
    p_all = jnp.concatenate(pooled, axis=0).astype(jnp.bfloat16)   # (4*TN, C)

    # 1x1 conv + folded BN1 + ReLU for all 4 positions at once.
    h1 = jnp.dot(p_all, w1_ref[...], preferred_element_type=jnp.float32)
    h1 = jnp.maximum(h1 * s1_ref[...] + b1_ref[...], 0.0)
    h1 = h1.astype(jnp.bfloat16)                                   # (4*TN, 128)

    # 2x2 conv == sum over the 4 positions of (TN,128)@(128,768), f32 acc.
    # Keeps everything lane-aligned (no sublane->lane reshape of h1).
    h2 = jnp.dot(h1[0:tn], w2_ref[0], preferred_element_type=jnp.float32)
    for p in range(1, 4):
        h2 = h2 + jnp.dot(h1[p * tn:(p + 1) * tn], w2_ref[p],
                          preferred_element_type=jnp.float32)
    h2 = jnp.maximum(h2 * s2_ref[...] + b2_ref[...], 0.0)
    h2 = h2.astype(jnp.bfloat16)                                   # (TN, 768)

    # Classifier; output block is lane-dense (NOUT is a multiple of 128).
    out_ref[...] = (jnp.dot(h2, wl_ref[...],
                            preferred_element_type=jnp.float32) + bl_ref[...])


# --------------------------------------------------------------------------
# One-time parameter preparation (hoisted out of the per-call path).
# --------------------------------------------------------------------------
def prepare_params(params, eps=1e-5):
    n_classes = params["lin_w"].shape[0]
    n_out = _round_up(n_classes, 128)

    # Conv1 (128, C, 1, 1) -> (C, 128); fold the average-pool 1/25 scale.
    w1 = jnp.transpose(params["conv1_w"][:, :, 0, 0], (1, 0)) * (1.0 / 25.0)
    # Conv2 (768, 128, 2, 2) -> (di, dj, c, k) -> (4, 128, 768).
    w2 = jnp.transpose(params["conv2_w"], (2, 3, 1, 0)).reshape(4, 128, 768)
    # Linear (n_classes, 768) -> (768, n_out), lane-padded.
    wl = jnp.transpose(params["lin_w"], (1, 0))
    wl = jnp.pad(wl, ((0, 0), (0, n_out - n_classes)))
    bl = jnp.pad(params["lin_b"], (0, n_out - n_classes)).reshape(1, n_out)

    # Fold inference-mode BatchNorm into per-channel scale / bias.
    g1, be1, m1, v1 = params["bn1"]
    g2, be2, m2, v2 = params["bn2"]
    s1 = g1 / jnp.sqrt(v1 + eps)
    b1 = be1 - m1 * s1
    s2 = g2 / jnp.sqrt(v2 + eps)
    b2 = be2 - m2 * s2

    prep = {
        "w1": w1.astype(jnp.bfloat16),
        "s1": s1.reshape(1, -1).astype(jnp.float32),
        "b1": b1.reshape(1, -1).astype(jnp.float32),
        "w2": w2.astype(jnp.bfloat16),
        "s2": s2.reshape(1, -1).astype(jnp.float32),
        "b2": b2.reshape(1, -1).astype(jnp.float32),
        "wl": wl.astype(jnp.bfloat16),
        "bl": bl.astype(jnp.float32),
    }
    return prep, n_classes


# --------------------------------------------------------------------------
# Wrapper: layout glue + gridded pallas_call.
# --------------------------------------------------------------------------
def auxiliary_head_forward(x_nchw, prep, input_size, n_classes):
    if input_size not in (7, 8):
        raise ValueError("unknown input_size: %r" % (input_size,))
    N, C, H, W = x_nchw.shape
    assert H == input_size and W == input_size
    stride = input_size - 5
    n_out = prep["wl"].shape[1]

    # NCHW -> NHWC; bf16 halves the only large HBM->VMEM DMA.
    x = jnp.transpose(x_nchw, (0, 2, 3, 1)).astype(jnp.bfloat16)

    # Batch tile: multiple of 8 (sublane-dense), sized so a double-buffered x
    # tile stays well inside v7x's 64 MiB VMEM and the default scoped limits.
    per_row_bytes = H * W * C * 2
    tn_cap = max(8, min(128, (24 * 1024 * 1024 // (2 * per_row_bytes)) // 8 * 8))
    tn = min(tn_cap, _round_up(N, 8))
    n_pad = _round_up(N, tn)
    if n_pad != N:
        x = jnp.pad(x, ((0, n_pad - N), (0, 0), (0, 0), (0, 0)))
    grid = (n_pad // tn,)

    kernel = functools.partial(_aux_head_kernel, stride=stride)
    const2 = lambda i: (0, 0)

    flops = 2 * n_pad * (4 * C * 128 + 4 * 128 * 768 + 768 * n_out)
    bytes_accessed = (n_pad * H * W * C * 2            # x (bf16)
                      + C * 128 * 2 + 4 * 128 * 768 * 2 + 768 * n_out * 2
                      + (128 + 768 + n_out) * 2 * 4    # BN/bias vectors (f32)
                      + n_pad * n_out * 4)             # output (f32)

    out = pl.pallas_call(
        kernel,
        out_shape=jax.ShapeDtypeStruct((n_pad, n_out), jnp.float32),
        grid=grid,
        in_specs=[
            pl.BlockSpec((tn, H, W, C), lambda i: (i, 0, 0, 0)),   # streamed x
            pl.BlockSpec((C, 128), const2),                        # resident
            pl.BlockSpec((1, 128), const2),
            pl.BlockSpec((1, 128), const2),
            pl.BlockSpec((4, 128, 768), lambda i: (0, 0, 0)),
            pl.BlockSpec((1, 768), const2),
            pl.BlockSpec((1, 768), const2),
            pl.BlockSpec((768, n_out), const2),
            pl.BlockSpec((1, n_out), const2),
        ],
        out_specs=pl.BlockSpec((tn, n_out), lambda i: (i, 0)),
        compiler_params=pltpu.CompilerParams(
            dimension_semantics=("parallel",),
            vmem_limit_bytes=64 * 1024 * 1024),
        cost_estimate=pl.CostEstimate(flops=flops, transcendentals=0,
                                      bytes_accessed=bytes_accessed),
    )(x, prep["w1"], prep["s1"], prep["b1"], prep["w2"], prep["s2"],
      prep["b2"], prep["wl"], prep["bl"])

    return out[:N, :n_classes]


# --------------------------------------------------------------------------
# Pure-JAX reference (independent path: reduce_window + conv_general_dilated).
# --------------------------------------------------------------------------
def reference_forward(x, params, input_size):
    stride = input_size - 5
    eps = 1e-5

    def bn(h, stats):
        g, b, m, v = stats
        return ((h - m[None, :, None, None])
                / jnp.sqrt(v[None, :, None, None] + eps)
                * g[None, :, None, None] + b[None, :, None, None])

    h = jnp.maximum(x, 0.0)
    h = jax.lax.reduce_window(h, 0.0, jax.lax.add,
                              (1, 1, 5, 5), (1, 1, stride, stride),
                              "VALID") / 25.0
    h = jax.lax.conv_general_dilated(h, params["conv1_w"], (1, 1), "VALID",
                                     dimension_numbers=("NCHW", "OIHW", "NCHW"))
    h = jnp.maximum(bn(h, params["bn1"]), 0.0)
    h = jax.lax.conv_general_dilated(h, params["conv2_w"], (1, 1), "VALID",
                                     dimension_numbers=("NCHW", "OIHW", "NCHW"))
    h = jnp.maximum(bn(h, params["bn2"]), 0.0)
    h = h.reshape(h.shape[0], -1)
    return h @ params["lin_w"].T + params["lin_b"]


if __name__ == "__main__":
    N, C, input_size, n_classes = 2, 8, 8, 10

    key = jax.random.PRNGKey(0)
    keys = jax.random.split(key, 12)

    x = jax.random.normal(keys[0], (N, C, input_size, input_size), jnp.float32)

    params = {
        "conv1_w": 0.1 * jax.random.normal(keys[1], (128, C, 1, 1), jnp.float32),
        "bn1": (1.0 + 0.1 * jax.random.normal(keys[2], (128,), jnp.float32),   # gamma
                0.1 * jax.random.normal(keys[3], (128,), jnp.float32),         # beta
                0.1 * jax.random.normal(keys[4], (128,), jnp.float32),         # running mean
                jax.random.uniform(keys[5], (128,), jnp.float32, 0.5, 1.5)),   # running var
        "conv2_w": 0.05 * jax.random.normal(keys[6], (768, 128, 2, 2), jnp.float32),
        "bn2": (1.0 + 0.1 * jax.random.normal(keys[7], (768,), jnp.float32),
                0.1 * jax.random.normal(keys[8], (768,), jnp.float32),
                0.1 * jax.random.normal(keys[9], (768,), jnp.float32),
                jax.random.uniform(keys[10], (768,), jnp.float32, 0.5, 1.5)),
        "lin_w": 0.05 * jax.random.normal(keys[11], (n_classes, 768), jnp.float32),
        "lin_b": 0.01 * jnp.arange(n_classes, dtype=jnp.float32),
    }

    prep, ncls = prepare_params(params)
    fwd = jax.jit(auxiliary_head_forward, static_argnums=(2, 3))

    logits = jax.block_until_ready(fwd(x, prep, input_size, ncls))
    ref = jax.block_until_ready(reference_forward(x, params, input_size))

    # bf16 matmul operands (f32 accumulation) -> slightly looser tolerance.
    if not jnp.allclose(logits, ref, rtol=3e-2, atol=3e-2):
        raise AssertionError(
            "mismatch vs reference; max abs diff = %e"
            % float(jnp.max(jnp.abs(logits - ref))))

    print("KERNEL_OK")
</pallas_src>

<mosaic_0001>
module attributes {stable_mosaic.version = 11 : i64} {
  func.func @_aux_head_kernel(%arg0: i32, %arg1: memref<8x8x8x8xbf16, #tpu.memory_space<vmem>>, %arg2: memref<8x128xbf16, #tpu.memory_space<vmem>>, %arg3: memref<1x128xf32, #tpu.memory_space<vmem>>, %arg4: memref<1x128xf32, #tpu.memory_space<vmem>>, %arg5: memref<4x128x768xbf16, #tpu.memory_space<vmem>>, %arg6: memref<1x768xf32, #tpu.memory_space<vmem>>, %arg7: memref<1x768xf32, #tpu.memory_space<vmem>>, %arg8: memref<768x128xbf16, #tpu.memory_space<vmem>>, %arg9: memref<1x128xf32, #tpu.memory_space<vmem>>, %arg10: memref<8x128xf32, #tpu.memory_space<vmem>>) attributes {dimension_semantics = [#tpu.dimension_semantics<parallel>], iteration_bounds = array<i64: 1>, scalar_prefetch = 0 : i64, scratch_operands = 0 : i64, tpu.core_type = #tpu.core_type<tc>, window_params = [{transform_indices = @transform_0, window_bounds = array<i64: 8, 8, 8, 8>}, {pipeline_mode = #tpu.pipeline_mode<synchronous>, transform_indices = @transform_1, window_bounds = array<i64: 8, 128>}, {pipeline_mode = #tpu.pipeline_mode<synchronous>, transform_indices = @transform_2, window_bounds = array<i64: 1, 128>}, {pipeline_mode = #tpu.pipeline_mode<synchronous>, transform_indices = @transform_3, window_bounds = array<i64: 1, 128>}, {pipeline_mode = #tpu.pipeline_mode<synchronous>, transform_indices = @transform_4, window_bounds = array<i64: 4, 128, 768>}, {pipeline_mode = #tpu.pipeline_mode<synchronous>, transform_indices = @transform_5, window_bounds = array<i64: 1, 768>}, {pipeline_mode = #tpu.pipeline_mode<synchronous>, transform_indices = @transform_6, window_bounds = array<i64: 1, 768>}, {pipeline_mode = #tpu.pipeline_mode<synchronous>, transform_indices = @transform_7, window_bounds = array<i64: 768, 128>}, {pipeline_mode = #tpu.pipeline_mode<synchronous>, transform_indices = @transform_8, window_bounds = array<i64: 1, 128>}, {transform_indices = @transform_9, window_bounds = array<i64: 8, 128>}]} {
    %c0 = arith.constant 0 : index
    %c0_0 = arith.constant 0 : index
    %c0_1 = arith.constant 0 : index
    %c0_2 = arith.constant 0 : index
    %0 = vector.load %arg1[%c0, %c0_0, %c0_1, %c0_2] : memref<8x8x8x8xbf16, #tpu.memory_space<vmem>>, vector<8x8x8x8xbf16>
    %1 = arith.extf %0 : vector<8x8x8x8xbf16> to vector<8x8x8x8xf32>
    %cst = arith.constant 0.000000e+00 : f32
    %2 = vector.broadcast %cst : f32 to vector<8x8x8x8xf32>
    %3 = arith.maximumf %1, %2 : vector<8x8x8x8xf32>
    %4 = vector.extract_strided_slice %3 {offsets = [0, 0, 0, 0], sizes = [8, 5, 5, 8], strides = [1, 1, 1, 1]} : vector<8x8x8x8xf32> to vector<8x5x5x8xf32>
    %cst_3 = arith.constant dense<0.000000e+00> : vector<8x8xf32>
    %5 = vector.multi_reduction <add>, %4, %cst_3 [1, 2] : vector<8x5x5x8xf32> to vector<8x8xf32>
    %6 = vector.extract_strided_slice %3 {offsets = [0, 0, 3, 0], sizes = [8, 5, 5, 8], strides = [1, 1, 1, 1]} : vector<8x8x8x8xf32> to vector<8x5x5x8xf32>
    %cst_4 = arith.constant dense<0.000000e+00> : vector<8x8xf32>
    %7 = vector.multi_reduction <add>, %6, %cst_4 [1, 2] : vector<8x5x5x8xf32> to vector<8x8xf32>
    %8 = vector.extract_strided_slice %3 {offsets = [0, 3, 0, 0], sizes = [8, 5, 5, 8], strides = [1, 1, 1, 1]} : vector<8x8x8x8xf32> to vector<8x5x5x8xf32>
    %cst_5 = arith.constant dense<0.000000e+00> : vector<8x8xf32>
    %9 = vector.multi_reduction <add>, %8, %cst_5 [1, 2] : vector<8x5x5x8xf32> to vector<8x8xf32>
    %10 = vector.extract_strided_slice %3 {offsets = [0, 3, 3, 0], sizes = [8, 5, 5, 8], strides = [1, 1, 1, 1]} : vector<8x8x8x8xf32> to vector<8x5x5x8xf32>
    %cst_6 = arith.constant dense<0.000000e+00> : vector<8x8xf32>
    %11 = vector.multi_reduction <add>, %10, %cst_6 [1, 2] : vector<8x5x5x8xf32> to vector<8x8xf32>
    %12 = tpu.concatenate %5, %7, %9, %11 in 0 : vector<8x8xf32>, vector<8x8xf32>, vector<8x8xf32>, vector<8x8xf32> -> vector<32x8xf32>
    %13 = arith.truncf %12 : vector<32x8xf32> to vector<32x8xbf16>
    %c0_7 = arith.constant 0 : index
    %c0_8 = arith.constant 0 : index
    %14 = vector.load %arg2[%c0_7, %c0_8] : memref<8x128xbf16, #tpu.memory_space<vmem>>, vector<8x128xbf16>
    %cst_9 = arith.constant dense<0.000000e+00> : vector<32x128xf32>
    %15 = tpu.matmul %13, %14, %cst_9 {dimension_numbers = #tpu.dot_dimension_numbers<[1], [0], [0], [1], [0, 0, 1, 1], [], []>} : vector<32x8xbf16>, vector<8x128xbf16>, vector<32x128xf32> -> vector<32x128xf32>
    %c0_10 = arith.constant 0 : index
    %c0_11 = arith.constant 0 : index
    %16 = vector.load %arg3[%c0_10, %c0_11] : memref<1x128xf32, #tpu.memory_space<vmem>>, vector<1x128xf32>
    %17 = vector.broadcast %16 : vector<1x128xf32> to vector<32x128xf32>
    %18 = arith.mulf %15, %17 : vector<32x128xf32>
    %c0_12 = arith.constant 0 : index
    %c0_13 = arith.constant 0 : index
    %19 = vector.load %arg4[%c0_12, %c0_13] : memref<1x128xf32, #tpu.memory_space<vmem>>, vector<1x128xf32>
    %20 = vector.broadcast %19 : vector<1x128xf32> to vector<32x128xf32>
    %21 = arith.addf %18, %20 : vector<32x128xf32>
    %cst_14 = arith.constant 0.000000e+00 : f32
    %22 = vector.broadcast %cst_14 : f32 to vector<32x128xf32>
    %23 = arith.maximumf %21, %22 : vector<32x128xf32>
    %24 = arith.truncf %23 : vector<32x128xf32> to vector<32x128xbf16>
    %25 = vector.extract_strided_slice %24 {offsets = [0, 0], sizes = [8, 128], strides = [1, 1]} : vector<32x128xbf16> to vector<8x128xbf16>
    %c0_15 = arith.constant 0 : index
    %c0_16 = arith.constant 0 : index
    %c0_17 = arith.constant 0 : index
    %26 = vector.load %arg5[%c0_15, %c0_16, %c0_17] : memref<4x128x768xbf16, #tpu.memory_space<vmem>>, vector<1x128x768xbf16>
    %27 = vector.shape_cast %26 : vector<1x128x768xbf16> to vector<128x768xbf16>
    %cst_18 = arith.constant dense<0.000000e+00> : vector<8x768xf32>
    %28 = tpu.matmul %25, %27, %cst_18 {dimension_numbers = #tpu.dot_dimension_numbers<[1], [0], [0], [1], [0, 0, 1, 1], [], []>} : vector<8x128xbf16>, vector<128x768xbf16>, vector<8x768xf32> -> vector<8x768xf32>
    %29 = vector.extract_strided_slice %24 {offsets = [8, 0], sizes = [8, 128], strides = [1, 1]} : vector<32x128xbf16> to vector<8x128xbf16>
    %c1 = arith.constant 1 : index
    %c0_19 = arith.constant 0 : index
    %c0_20 = arith.constant 0 : index
    %30 = vector.load %arg5[%c1, %c0_19, %c0_20] : memref<4x128x768xbf16, #tpu.memory_space<vmem>>, vector<1x128x768xbf16>
    %31 = vector.shape_cast %30 : vector<1x128x768xbf16> to vector<128x768xbf16>
    %cst_21 = arith.constant dense<0.000000e+00> : vector<8x768xf32>
    %32 = tpu.matmul %29, %31, %cst_21 {dimension_numbers = #tpu.dot_dimension_numbers<[1], [0], [0], [1], [0, 0, 1, 1], [], []>} : vector<8x128xbf16>, vector<128x768xbf16>, vector<8x768xf32> -> vector<8x768xf32>
    %33 = arith.addf %28, %32 : vector<8x768xf32>
    %34 = vector.extract_strided_slice %24 {offsets = [16, 0], sizes = [8, 128], strides = [1, 1]} : vector<32x128xbf16> to vector<8x128xbf16>
    %c2 = arith.constant 2 : index
    %c0_22 = arith.constant 0 : index
    %c0_23 = arith.constant 0 : index
    %35 = vector.load %arg5[%c2, %c0_22, %c0_23] : memref<4x128x768xbf16, #tpu.memory_space<vmem>>, vector<1x128x768xbf16>
    %36 = vector.shape_cast %35 : vector<1x128x768xbf16> to vector<128x768xbf16>
    %cst_24 = arith.constant dense<0.000000e+00> : vector<8x768xf32>
    %37 = tpu.matmul %34, %36, %cst_24 {dimension_numbers = #tpu.dot_dimension_numbers<[1], [0], [0], [1], [0, 0, 1, 1], [], []>} : vector<8x128xbf16>, vector<128x768xbf16>, vector<8x768xf32> -> vector<8x768xf32>
    %38 = arith.addf %33, %37 : vector<8x768xf32>
    %39 = vector.extract_strided_slice %24 {offsets = [24, 0], sizes = [8, 128], strides = [1, 1]} : vector<32x128xbf16> to vector<8x128xbf16>
    %c3 = arith.constant 3 : index
    %c0_25 = arith.constant 0 : index
    %c0_26 = arith.constant 0 : index
    %40 = vector.load %arg5[%c3, %c0_25, %c0_26] : memref<4x128x768xbf16, #tpu.memory_space<vmem>>, vector<1x128x768xbf16>
    %41 = vector.shape_cast %40 : vector<1x128x768xbf16> to vector<128x768xbf16>
    %cst_27 = arith.constant dense<0.000000e+00> : vector<8x768xf32>
    %42 = tpu.matmul %39, %41, %cst_27 {dimension_numbers = #tpu.dot_dimension_numbers<[1], [0], [0], [1], [0, 0, 1, 1], [], []>} : vector<8x128xbf16>, vector<128x768xbf16>, vector<8x768xf32> -> vector<8x768xf32>
    %43 = arith.addf %38, %42 : vector<8x768xf32>
    %c0_28 = arith.constant 0 : index
    %c0_29 = arith.constant 0 : index
    %44 = vector.load %arg6[%c0_28, %c0_29] : memref<1x768xf32, #tpu.memory_space<vmem>>, vector<1x768xf32>
    %45 = vector.broadcast %44 : vector<1x768xf32> to vector<8x768xf32>
    %46 = arith.mulf %43, %45 : vector<8x768xf32>
    %c0_30 = arith.constant 0 : index
    %c0_31 = arith.constant 0 : index
    %47 = vector.load %arg7[%c0_30, %c0_31] : memref<1x768xf32, #tpu.memory_space<vmem>>, vector<1x768xf32>
    %48 = vector.broadcast %47 : vector<1x768xf32> to vector<8x768xf32>
    %49 = arith.addf %46, %48 : vector<8x768xf32>
    %cst_32 = arith.constant 0.000000e+00 : f32
    %50 = vector.broadcast %cst_32 : f32 to vector<8x768xf32>
    %51 = arith.maximumf %49, %50 : vector<8x768xf32>
    %52 = arith.truncf %51 : vector<8x768xf32> to vector<8x768xbf16>
    %c0_33 = arith.constant 0 : index
    %c0_34 = arith.constant 0 : index
    %53 = vector.load %arg8[%c0_33, %c0_34] : memref<768x128xbf16, #tpu.memory_space<vmem>>, vector<768x128xbf16>
    %cst_35 = arith.constant dense<0.000000e+00> : vector<8x128xf32>
    %54 = tpu.matmul %52, %53, %cst_35 {dimension_numbers = #tpu.dot_dimension_numbers<[1], [0], [0], [1], [0, 0, 1, 1], [], []>} : vector<8x768xbf16>, vector<768x128xbf16>, vector<8x128xf32> -> vector<8x128xf32>
    %c0_36 = arith.constant 0 : index
    %c0_37 = arith.constant 0 : index
    %55 = vector.load %arg9[%c0_36, %c0_37] : memref<1x128xf32, #tpu.memory_space<vmem>>, vector<1x128xf32>
    %56 = vector.broadcast %55 : vector<1x128xf32> to vector<8x128xf32>
    %57 = arith.addf %54, %56 : vector<8x128xf32>
    %c0_38 = arith.constant 0 : index
    %c0_39 = arith.constant 0 : index
    %58 = vector.load %arg10[%c0_38, %c0_39] : memref<8x128xf32, #tpu.memory_space<vmem>>, vector<8x128xf32>
    tpu.vector_store %arg10[%c0_38, %c0_39], %57 {strides = array<i32>} : memref<8x128xf32, #tpu.memory_space<vmem>>, vector<8x128xf32>,
    return
  }
  func.func @transform_0(%arg0: i32) -> (i32, i32, i32, i32) {
    %c0_i32 = arith.constant 0 : i32
    %c0_i32_0 = arith.constant 0 : i32
    %c0_i32_1 = arith.constant 0 : i32
    %c0_i32_2 = arith.constant 0 : i32
    return %arg0, %c0_i32, %c0_i32_0, %c0_i32_1 : i32, i32, i32, i32
  }
  func.func @transform_1(%arg0: i32) -> (i32, i32) {
    %c0_i32 = arith.constant 0 : i32
    %c0_i32_0 = arith.constant 0 : i32
    %c0_i32_1 = arith.constant 0 : i32
    return %c0_i32, %c0_i32_0 : i32, i32
  }
  func.func @transform_2(%arg0: i32) -> (i32, i32) {
    %c0_i32 = arith.constant 0 : i32
    %c0_i32_0 = arith.constant 0 : i32
    %c0_i32_1 = arith.constant 0 : i32
    return %c0_i32, %c0_i32_0 : i32, i32
  }
  func.func @transform_3(%arg0: i32) -> (i32, i32) {
    %c0_i32 = arith.constant 0 : i32
    %c0_i32_0 = arith.constant 0 : i32
    %c0_i32_1 = arith.constant 0 : i32
    return %c0_i32, %c0_i32_0 : i32, i32
  }
  func.func @transform_4(%arg0: i32) -> (i32, i32, i32) {
    %c0_i32 = arith.constant 0 : i32
    %c0_i32_0 = arith.constant 0 : i32
    %c0_i32_1 = arith.constant 0 : i32
    %c0_i32_2 = arith.constant 0 : i32
    return %c0_i32, %c0_i32_0, %c0_i32_1 : i32, i32, i32
  }
  func.func @transform_5(%arg0: i32) -> (i32, i32) {
    %c0_i32 = arith.constant 0 : i32
    %c0_i32_0 = arith.constant 0 : i32
    %c0_i32_1 = arith.constant 0 : i32
    return %c0_i32, %c0_i32_0 : i32, i32
  }
  func.func @transform_6(%arg0: i32) -> (i32, i32) {
    %c0_i32 = arith.constant 0 : i32
    %c0_i32_0 = arith.constant 0 : i32
    %c0_i32_1 = arith.constant 0 : i32
    return %c0_i32, %c0_i32_0 : i32, i32
  }
  func.func @transform_7(%arg0: i32) -> (i32, i32) {
    %c0_i32 = arith.constant 0 : i32
    %c0_i32_0 = arith.constant 0 : i32
    %c0_i32_1 = arith.constant 0 : i32
    return %c0_i32, %c0_i32_0 : i32, i32
  }
  func.func @transform_8(%arg0: i32) -> (i32, i32) {
    %c0_i32 = arith.constant 0 : i32
    %c0_i32_0 = arith.constant 0 : i32
    %c0_i32_1 = arith.constant 0 : i32
    return %c0_i32, %c0_i32_0 : i32, i32
  }
  func.func @transform_9(%arg0: i32) -> (i32, i32) {
    %c0_i32 = arith.constant 0 : i32
    %c0_i32_0 = arith.constant 0 : i32
    return %arg0, %c0_i32 : i32, i32
  }
}

</mosaic_0001>

<bundles_post_ra>
// kernel: auxiliary_head_forward.1
= control target key start
LH: loop header
LB: loop body
LE: loop exit
PB: predicated region body
PF: predicated region fallthrough
CT: control target
= control target key end

     0   :  { %14 = vsyncpa [#allocation3], 0  ;;  %s5665_s0 = inlined_call_operand.hbm [shape: bf16[8,8,8,8], index: 0, kind: input, shape index: {}]   ;;  %s5666_s1 = inlined_call_operand.hbm [shape: bf16[8,128], index: 1, kind: input, shape index: {}]   ;;  %s5667_s2 = inlined_call_operand.hbm [shape: f32[1,128], index: 2, kind: input, shape index: {}]   ;;  %s5668_s3 = inlined_call_operand.hbm [shape: f32[1,128], index: 3, kind: input, shape index: {}]   ;;  %s5669_s4 = inlined_call_operand.hbm [shape: bf16[4,128,768], index: 4, kind: input, shape index: {}]   ;;  %s5670_s5 = inlined_call_operand.hbm [shape: f32[1,768], index: 5, kind: input, shape index: {}]   ;;  %s5671_s6 = inlined_call_operand.hbm [shape: f32[1,768], index: 6, kind: input, shape index: {}]   ;;  %s5672_s7 = inlined_call_operand.hbm [shape: bf16[768,128], index: 7, kind: input, shape index: {}]   ;;  %s5673_s8 = inlined_call_operand.hbm [shape: f32[1,128], index: 8, kind: input, shape index: {}]   ;;  %s5674_s9 = inlined_call_operand.hbm [shape: f32[8,128], index: 9, kind: output, shape index: {}]  }
   0x1   :  { %15 = vsyncpa [#allocation6], 0 }
   0x2   :  { %16 = vsyncpa [#allocation9], 0 }
   0x3   :  { %17 = vsyncpa [#allocation12], 0 }
   0x4   :  { %18 = vsyncpa [#allocation15], 0 }
   0x5   :  { %19 = vsyncpa [#allocation4], 0  ;;  %s4530_s30 = smov [#allocation5]   ;;  %s4531_s11 = smov [#allocation8]  }
   0x6   :  { %s38_s10 = sshll.u32 %s4530_s30, 4  ;;  %s58_s12 = sshll.u32 %s4531_s11, 4  ;;  %s39_s10 = int_to_ptr.vmem [resolvable:$true] %s38_s10  ;;  %s59_s12 = int_to_ptr.vmem [resolvable:$true] %s58_s12 }
   0x7   :  { %s4298_s15 = scalar_lea.hbm %s5666_s1, 64 }
   0x8   :  { %p4299_p0 = scmp.ne.s32.totalorder %s5666_s1, %s4298_s15  ;;  %p4302_p1 = scmp.lt.u32.totalorder %s4298_s15, %s5666_s1 }
   0xa   :  { %p4304_p2 = pnand %p4302_p1, %p4299_p0 }
   0xc   :  { %4307 = shalt.err (!%p4304_p2)
}
   0xd   :  { %s4308_s20 = scalar_lea.vmem %s39_s10, 64  ;;  %p4313_p4 = scmp.lt.s32.totalorder %s39_s10, %s39_s10 }
   0xe   :  { %p4309_p3 = scmp.ne.s32.totalorder %s39_s10, %s4308_s20  ;;  %p4314_p5 = scmp.lt.s32.totalorder %s4308_s20, %s4308_s20 }
  0x10   :  { %p4315_p6 = por %p4314_p5, %p4313_p4 }
  0x12   :  { %p4316_p7 = pnand %p4315_p6, %p4309_p3 }
  0x14   :  { %4319 = shalt.err (!%p4316_p7)
}
  0x15   :  { %41 = dma.hbm_to_vmem [thread:$0]  %s5666_s1, 64, %s39_s10, [#allocation6]  }
  0x16   :  { %s4320_s25 = scalar_lea.hbm %s5668_s3, 16 }
  0x17   :  { %p4321_p8 = scmp.ne.s32.totalorder %s5668_s3, %s4320_s25  ;;  %p4324_p9 = scmp.lt.u32.totalorder %s4320_s25, %s5668_s3 }
  0x19   :  { %p4326_p10 = pnand %p4324_p9, %p4321_p8 }
  0x1b   :  { %4329 = shalt.err (!%p4326_p10)
}
  0x1c   :  { %s4330_s30 = scalar_lea.vmem %s59_s12, 16  ;;  %s4334_s11 = scalar_lea.vmem %s59_s12, 32 }
  0x1d   :  { %p4331_p11 = scmp.ne.s32.totalorder %s59_s12, %s4330_s30  ;;  %p4335_p12 = scmp.lt.s32.totalorder %s59_s12, %s59_s12 }
  0x1e   :  { %p4336_p13 = scmp.lt.s32.totalorder %s4334_s11, %s4330_s30 }
  0x20   :  { %p4337_p0 = por %p4336_p13, %p4335_p12 }
  0x22   :  { %p4338_p1 = pnand %p4337_p0, %p4331_p11 }
  0x24   :  { %4341 = shalt.err (!%p4338_p1)
}
  0x25   :  { %61 = dma.hbm_to_vmem [thread:$0]  %s5668_s3, 16, %s59_s12, [#allocation9]  }
  0x26   :  { %s4532_s13 = smov [#allocation11]   ;;  %s4342_s17 = scalar_lea.hbm %s5670_s5, 96 }
  0x27   :  { %s80_s14 = sshll.u32 %s4532_s13, 4  ;;  %p4343_p2 = scmp.ne.s32.totalorder %s5670_s5, %s4342_s17  ;;  %s81_s14 = int_to_ptr.vmem [resolvable:$true] %s80_s14 }
  0x28   :  { %p4346_p3 = scmp.lt.u32.totalorder %s4342_s17, %s5670_s5 }
  0x2a   :  { %p4348_p4 = pnand %p4346_p3, %p4343_p2 }
  0x2c   :  { %4351 = shalt.err (!%p4348_p4)
}
  0x2d   :  { %s4352_s22 = scalar_lea.vmem %s81_s14, 96  ;;  %p4357_p6 = scmp.lt.s32.totalorder %s81_s14, %s81_s14 }
  0x2e   :  { %p4353_p5 = scmp.ne.s32.totalorder %s81_s14, %s4352_s22  ;;  %p4358_p7 = scmp.lt.s32.totalorder %s4352_s22, %s4352_s22 }
  0x30   :  { %p4359_p8 = por %p4358_p7, %p4357_p6 }
  0x32   :  { %p4360_p9 = pnand %p4359_p8, %p4353_p5 }
  0x34   :  { %4363 = shalt.err (!%p4360_p9)
}
  0x35   :  { %83 = dma.hbm_to_vmem [thread:$0]  %s5670_s5, 96, %s81_s14, [#allocation12]  }
  0x36   :  { %s4533_s23 = smov [#allocation14]   ;;  %s4534_s25 = smov [#allocation2]  }
  0x37   :  { %s99_s24 = sshll.u32 %s4533_s23, 4  ;;  %s25_s26 = sshll.u32 %s4534_s25, 4  ;;  %s100_s24 = int_to_ptr.vmem [resolvable:$true] %s99_s24  ;;  %s26_s26 = int_to_ptr.vmem [resolvable:$true] %s25_s26 }
  0x38   :  { %s4364_s29 = scalar_lea.hbm %s5672_s7, 6144 }
  0x39   :  { %p4365_p10 = scmp.ne.s32.totalorder %s5672_s7, %s4364_s29  ;;  %p4368_p11 = scmp.lt.u32.totalorder %s4364_s29, %s5672_s7 }
  0x3b   :  { %p4370_p12 = pnand %p4368_p11, %p4365_p10 }
  0x3d   :  { %4373 = shalt.err (!%p4370_p12)
}
  0x3e   :  { %s4374_s5 = scalar_lea.vmem %s100_s24, 6144  ;;  %p4379_p0 = scmp.lt.s32.totalorder %s100_s24, %s100_s24 }
  0x3f   :  { %p4375_p13 = scmp.ne.s32.totalorder %s100_s24, %s4374_s5  ;;  %p4380_p1 = scmp.lt.s32.totalorder %s4374_s5, %s4374_s5 }
  0x41   :  { %p4381_p2 = por %p4380_p1, %p4379_p0 }
  0x43   :  { %p4382_p3 = pnand %p4381_p2, %p4375_p13 }
  0x45   :  { %4385 = shalt.err (!%p4382_p3)
}
  0x46   :  { %s4535_s13 = smov 64   ;;  %s4536_s14 = smov 4  }
  0x47   :  { %105 = dma.hbm_to_vmem [thread:$0]  %s5672_s7, 6144, %s100_s24, [#allocation15], %s4535_s13, %s4535_s13, %s4536_s14  }
  0x48   :  { %s4386_s19 = scalar_lea.hbm %s5665_s0, 4096 }
  0x49   :  { %p4387_p4 = scmp.ne.s32.totalorder %s5665_s0, %s4386_s19  ;;  %p4390_p5 = scmp.lt.u32.totalorder %s4386_s19, %s5665_s0 }
  0x4b   :  { %p4392_p6 = pnand %p4390_p5, %p4387_p4 }
  0x4d   :  { %4395 = shalt.err (!%p4392_p6)
}
  0x4e   :  { %s4396_s12 = scalar_lea.vmem %s26_s26, 4096  ;;  %p4401_p8 = scmp.lt.s32.totalorder %s26_s26, %s26_s26 }
  0x4f   :  { %p4397_p7 = scmp.ne.s32.totalorder %s26_s26, %s4396_s12  ;;  %p4402_p9 = scmp.lt.s32.totalorder %s4396_s12, %s4396_s12 }
  0x51   :  { %p4403_p10 = por %p4402_p9, %p4401_p8 }
  0x53   :  { %p4404_p11 = pnand %p4403_p10, %p4397_p7 }
  0x55   :  { %4407 = shalt.err (!%p4404_p11)
}
  0x56   :  { %31 = dma.hbm_to_vmem [thread:$0]  %s5665_s0, 4096, %s26_s26, [#allocation3], %s4535_s13, %s4535_s13, %s4536_s14  }
  0x57   :  { %s4537_s24 = smov [#allocation7]   ;;  %s4538_s27 = smov [#allocation10]  }
  0x58   :  { %s48_s25 = sshll.u32 %s4537_s24, 4  ;;  %s67_s28 = sshll.u32 %s4538_s27, 4  ;;  %s49_s25 = int_to_ptr.vmem [resolvable:$true] %s48_s25  ;;  %s68_s28 = int_to_ptr.vmem [resolvable:$true] %s67_s28 }
  0x59   :  { %s4408_s11 = scalar_lea.hbm %s5667_s2, 16 }
  0x5a   :  { %p4409_p12 = scmp.ne.s32.totalorder %s5667_s2, %s4408_s11  ;;  %p4412_p13 = scmp.lt.u32.totalorder %s4408_s11, %s5667_s2 }
  0x5c   :  { %p4414_p0 = pnand %p4412_p13, %p4409_p12 }
  0x5e   :  { %4417 = shalt.err (!%p4414_p0)
}
  0x5f   :  { %s4418_s0 = scalar_lea.vmem %s49_s25, 16  ;;  %s4422_s26 = scalar_lea.vmem %s49_s25, 32 }
  0x60   :  { %p4419_p1 = scmp.ne.s32.totalorder %s49_s25, %s4418_s0  ;;  %p4423_p2 = scmp.lt.s32.totalorder %s49_s25, %s49_s25 }
  0x61   :  { %p4424_p3 = scmp.lt.s32.totalorder %s4422_s26, %s4418_s0 }
  0x63   :  { %p4425_p4 = por %p4424_p3, %p4423_p2 }
  0x65   :  { %p4426_p5 = pnand %p4425_p4, %p4419_p1 }
  0x67   :  { %4429 = shalt.err (!%p4426_p5)
}
  0x68   :  { %51 = dma.hbm_to_vmem [thread:$0]  %s5667_s2, 16, %s49_s25, [#allocation6]  }
  0x69   :  { %s4430_s18 = scalar_lea.hbm %s5669_s4, 24576 }
  0x6a   :  { %p4431_p6 = scmp.ne.s32.totalorder %s5669_s4, %s4430_s18  ;;  %p4434_p7 = scmp.lt.u32.totalorder %s4430_s18, %s5669_s4 }
  0x6c   :  { %p4436_p8 = pnand %p4434_p7, %p4431_p6 }
  0x6e   :  { %4439 = shalt.err (!%p4436_p8)
}
  0x6f   :  { %s4440_s3 = scalar_lea.vmem %s68_s28, 24576  ;;  %p4445_p10 = scmp.lt.s32.totalorder %s68_s28, %s68_s28 }
  0x70   :  { %p4441_p9 = scmp.ne.s32.totalorder %s68_s28, %s4440_s3  ;;  %p4446_p11 = scmp.lt.s32.totalorder %s4440_s3, %s4440_s3 }
  0x72   :  { %p4447_p12 = por %p4446_p11, %p4445_p10 }
  0x74   :  { %p4448_p13 = pnand %p4447_p12, %p4441_p9 }
  0x76   :  { %4451 = shalt.err (!%p4448_p13)
}
  0x77   :  { %s4539_s2 = smov 384   ;;  %s4540_s12 = smov 24  }
  0x78   :  { %73 = dma.hbm_to_vmem [thread:$0]  %s5669_s4, 24576, %s68_s28, [#allocation9], %s4539_s2, %s4539_s2, %s4540_s12  }
  0x79   :  { %s4541_s24 = smov [#allocation13]   ;;  %s4542_s27 = smov [#allocation16]  }
  0x7a   :  { %s90_s25 = sshll.u32 %s4541_s24, 4  ;;  %s112_s29 = sshll.u32 %s4542_s27, 4  ;;  %s91_s25 = int_to_ptr.vmem [resolvable:$true] %s90_s25  ;;  %s113_s29 = int_to_ptr.vmem [resolvable:$true] %s112_s29 }
  0x7b   :  { %s4452_s1 = scalar_lea.hbm %s5671_s6, 96 }
  0x7c   :  { %p4453_p0 = scmp.ne.s32.totalorder %s5671_s6, %s4452_s1  ;;  %p4456_p1 = scmp.lt.u32.totalorder %s4452_s1, %s5671_s6 }
  0x7e   :  { %p4458_p2 = pnand %p4456_p1, %p4453_p0 }
  0x80   :  { %4461 = shalt.err (!%p4458_p2)
}
  0x81   :  { %s4462_s4 = scalar_lea.vmem %s91_s25, 96  ;;  %p4467_p4 = scmp.lt.s32.totalorder %s91_s25, %s91_s25 }
  0x82   :  { %p4463_p3 = scmp.ne.s32.totalorder %s91_s25, %s4462_s4  ;;  %p4468_p5 = scmp.lt.s32.totalorder %s4462_s4, %s4462_s4 }
  0x84   :  { %p4469_p6 = por %p4468_p5, %p4467_p4 }
  0x86   :  { %p4470_p7 = pnand %p4469_p6, %p4463_p3 }
  0x88   :  { %4473 = shalt.err (!%p4470_p7)
}
  0x89   :  { %93 = dma.hbm_to_vmem [thread:$0]  %s5671_s6, 96, %s91_s25, [#allocation12]  }
  0x8a   :  { %s4474_s16 = scalar_lea.hbm %s5673_s8, 16 }
  0x8b   :  { %p4475_p8 = scmp.ne.s32.totalorder %s5673_s8, %s4474_s16  ;;  %p4478_p9 = scmp.lt.u32.totalorder %s4474_s16, %s5673_s8 }
  0x8d   :  { %p4480_p10 = pnand %p4478_p9, %p4475_p8 }
  0x8f   :  { %4483 = shalt.err (!%p4480_p10)
}
  0x90   :  { %s4484_s21 = scalar_lea.vmem %s113_s29, 16  ;;  %s4488_s22 = scalar_lea.vmem %s113_s29, 32 }
  0x91   :  { %p4485_p11 = scmp.ne.s32.totalorder %s113_s29, %s4484_s21  ;;  %p4489_p12 = scmp.lt.s32.totalorder %s113_s29, %s113_s29 }
  0x92   :  { %p4490_p13 = scmp.lt.s32.totalorder %s4488_s22, %s4484_s21 }
  0x94   :  { %p4491_p0 = por %p4490_p13, %p4489_p12 }
  0x96   :  { %p4492_p1 = pnand %p4491_p0, %p4485_p11 }
  0x98   :  { %4495 = shalt.err (!%p4492_p1)
}
  0x99   :  { %115 = dma.hbm_to_vmem [thread:$0]  %s5673_s8, 16, %s113_s29, [#allocation15]  }
  0x9a   :  { %4518 = dma.done.wait [#allocation3], 4096  }
  0x9b   :  { %4519 = vsyncadd [#allocation3], 4294963200 }
  0x9c   :  { %4520 = dma.done.wait [#allocation6], 80  }
  0x9d   :  { %4521 = vsyncadd [#allocation6], 4294967216 }
  0x9e   :  { %4522 = dma.done.wait [#allocation9], 24592  }
  0x9f   :  { %4523 = vsyncadd [#allocation9], 4294942704 }
  0xa0   :  { %4524 = dma.done.wait [#allocation12], 192  }
  0xa1   :  { %4525 = vsyncadd [#allocation12], 4294967104 }
  0xa2   :  { %4526 = dma.done.wait [#allocation15], 6160  }
  0xa3   :  { %4527 = vsyncadd [#allocation15], 4294961136  ;;  %vm1058_vm0 = vcmask 1043456   ;;  %v1050_v0 = vld [vmem:[#allocation5] sm:$0xf]  ;;  %v4705_v2 = vld [vmem:[#allocation2 + $0x8] sm:$0xff]  }
  0xa4   :  { %v4703_v1 = vld [vmem:[#allocation2] sm:$0xff]   ;;  %3938 = vmatprep.subr.msk.bf16.mxu0 %vm1058_vm0, %v1050_v0  ;;  %v1060_v3 = vsel %vm1058_vm0, %v1050_v0, 0  ;;  %v4708_v5 = vld [vmem:[#allocation2 + $0x10] sm:$0xff]   ;;  %v4710_v6 = vld [vmem:[#allocation2 + $0x18] sm:$0xff]   ;;  %v3674_v9 = vunpack.c.l.bf16 %v4705_v2  ;;  %v3675_v10 = vunpack.c.h.bf16 %v4705_v2  ;;  %vm336_vm1 = vcmask 61440   ;;  %s4544_s8 = smov [#allocation17]  }
  0xa5   :  { %v3670_v4 = vunpack.c.l.bf16 %v4703_v1  ;;  %v4712_v7 = vld [vmem:[#allocation2 + $0x20] sm:$0xff]   ;;  %3897 = vmatpush3.bf16.msra.mxu0 %v1060_v3  ;;  %v3671_v8 = vunpack.c.h.bf16 %v4703_v1  ;;  %v3678_v11 = vunpack.c.l.bf16 %v4708_v5  ;;  %v4718_v12 = vld [vmem:[#allocation2 + $0x28] sm:$0xff]   ;;  %v4720_v13 = vld [vmem:[#allocation2 + $0x30] sm:$0xff]   ;;  %v3679_v15 = vunpack.c.h.bf16 %v4708_v5  ;;  %s3410_s2 = sshll.u32 %s4544_s8, 4  ;;  %s3411_s2 = int_to_ptr.vmem [resolvable:$true] %s3410_s2 }
  0xa6   :  { %v4722_v14 = vld [vmem:[#allocation2 + $0x38] sm:$0xff]   ;;  %v3682_v16 = vunpack.c.l.bf16 %v4710_v6  ;;  %v3686_v17 = vunpack.c.l.bf16 %v4712_v7  ;;  %v3687_v18 = vunpack.c.h.bf16 %v4712_v7  ;;  %v4728_v19 = vld [vmem:[#allocation2 + $0x40] sm:$0xff]   ;;  %v4730_v20 = vld [vmem:[#allocation2 + $0x48] sm:$0xff]   ;;  %v3690_v22 = vunpack.c.l.bf16 %v4718_v12  ;;  %s4496_s12 = scalar_lea.vmem %s3411_s2, 128  ;;  %p4501_p3 = scmp.lt.s32.totalorder %s3411_s2, %s3411_s2 }
  0xa7   :  { %v4732_v21 = vld [vmem:[#allocation2 + $0x50] sm:$0xff]   ;;  %v3691_v23 = vunpack.c.h.bf16 %v4718_v12  ;;  %v3694_v24 = vunpack.c.l.bf16 %v4720_v13  ;;  %v3695_v25 = vunpack.c.h.bf16 %v4720_v13  ;;  %v4738_v26 = vld [vmem:[#allocation2 + $0x58] sm:$0xff]   ;;  %v4740_v27 = vld [vmem:[#allocation2 + $0x60] sm:$0xff]   ;;  %v4825_v29 = vmax.f32 %v3670_v4, 0.0  ;;  %p4497_p2 = scmp.ne.s32.totalorder %s3411_s2, %s4496_s12  ;;  %p4502_p4 = scmp.lt.s32.totalorder %s4496_s12, %s4496_s12 }
  0xa8   :  { %v4742_v28 = vld [vmem:[#allocation2 + $0x68] sm:$0xff]   ;;  %v4748_v33 = vld [vmem:[#allocation2 + $0x70] sm:$0xff]   ;;  %v4750_v34 = vld [vmem:[#allocation2 + $0x78] sm:$0xff]   ;;  %v4845_v4 = vmax.f32 %v3679_v15, 0.0  ;;  %v4849_v1 = vmax.f32 %v3682_v16, 0.0  ;;  %v4857_v2 = vmax.f32 %v3687_v18, 0.0  ;;  %v5716_v7 = vunpack.c.l.bf16 %v4722_v14 }
  0xa9   :  { %v4752_v35 = vld [vmem:[#allocation2 + $0x80] sm:$0xff]   ;;  %v4758_v40 = vld [vmem:[#allocation2 + $0x88] sm:$0xff]   ;;  %v4760_v41 = vld [vmem:[#allocation2 + $0x90] sm:$0xff]   ;;  %v4865_v5 = vmax.f32 %v3691_v23, 0.0  ;;  %v4869_v6 = vmax.f32 %v3694_v24, 0.0  ;;  %v5718_v15 = vunpack.c.l.bf16 %v4728_v19  ;;  %v5719_v12 = vunpack.c.h.bf16 %v4728_v19  ;;  %p4503_p5 = por %p4502_p4, %p4501_p3 }
  0xaa   :  { %v4762_v42 = vld [vmem:[#allocation2 + $0x98] sm:$0xff]   ;;  %v4768_v47 = vld [vmem:[#allocation2 + $0xa0] sm:$0xff]   ;;  %v4770_v48 = vld [vmem:[#allocation2 + $0xa8] sm:$0xff]   ;;  %v3735_v57 = vunpack.c.h.bf16 %v4752_v35  ;;  %v3738_v58 = vunpack.c.l.bf16 %v4758_v40  ;;  %v3739_v59 = vunpack.c.h.bf16 %v4758_v40  ;;  %v3742_v60 = vunpack.c.l.bf16 %v4760_v41  ;;  %5713 = vst [vmem:[#allocation24_spill] sm:$0xff] %v4845_v4 }
  0xab   :  { %v4772_v49 = vld [vmem:[#allocation2 + $0xb0] sm:$0xff]   ;;  %v4778_v54 = vld [vmem:[#allocation2 + $0xb8] sm:$0xff]   ;;  %v4780_v55 = vld [vmem:[#allocation2 + $0xc0] sm:$0xff]   ;;  %v3743_v0 = vunpack.c.h.bf16 %v4760_v41  ;;  %v3746_v3 = vunpack.c.l.bf16 %v4762_v42  ;;  %v3750_v53 = vunpack.c.l.bf16 %v4768_v47  ;;  %v3751_v52 = vunpack.c.h.bf16 %v4768_v47  ;;  %5714 = vst [vmem:[#allocation25_spill] sm:$0xff] %v4849_v1  ;;  %p4504_p6 = pnand %p4503_p5, %p4497_p2 }
  0xac   :  { %v4782_v56 = vld [vmem:[#allocation2 + $0xc8] sm:$0xff]   ;;  %v4788_v61 = vld [vmem:[#allocation2 + $0xd0] sm:$0xff]   ;;  %v4790_v62 = vld [vmem:[#allocation2 + $0xd8] sm:$0xff]   ;;  %v3754_v46 = vunpack.c.l.bf16 %v4770_v48  ;;  %v3755_v45 = vunpack.c.h.bf16 %v4770_v48  ;;  %v3758_v44 = vunpack.c.l.bf16 %v4772_v49  ;;  %v3759_v41 = vunpack.c.h.bf16 %v4772_v49 }
  0xad   :  { %v4792_v63 = vld [vmem:[#allocation2 + $0xe0] sm:$0xff]   ;;  %v4798_v51 = vld [vmem:[#allocation2 + $0xe8] sm:$0xff]   ;;  %v4800_v50 = vld [vmem:[#allocation2 + $0xf0] sm:$0xff]   ;;  %v3762_v42 = vunpack.c.l.bf16 %v4778_v54  ;;  %v3766_v43 = vunpack.c.l.bf16 %v4780_v55  ;;  %v3767_v47 = vunpack.c.h.bf16 %v4780_v55  ;;  %v3770_v39 = vunpack.c.l.bf16 %v4782_v56 }
  0xae   :  { %v4802_v40 = vld [vmem:[#allocation2 + $0xf8] sm:$0xff]   ;;  %v3771_v38 = vunpack.c.h.bf16 %v4782_v56  ;;  %v3774_v37 = vunpack.c.l.bf16 %v4788_v61  ;;  %v3775_v36 = vunpack.c.h.bf16 %v4788_v61  ;;  %v3778_v48 = vunpack.c.l.bf16 %v4790_v62 }
  0xaf   :  { %v3782_v32 = vunpack.c.l.bf16 %v4792_v63  ;;  %v3783_v49 = vunpack.c.h.bf16 %v4792_v63  ;;  %v3786_v54 = vunpack.c.l.bf16 %v4798_v51  ;;  %v3787_v31 = vunpack.c.h.bf16 %v4798_v51 }
  0xb0   :  { %v3790_v55 = vunpack.c.l.bf16 %v4800_v50  ;;  %v3791_v30 = vunpack.c.h.bf16 %v4800_v50  ;;  %v4829_v61 = vmax.f32 %v3671_v8, 0.0  ;;  %v4833_v62 = vmax.f32 %v3674_v9, 0.0 }
  0xb1   :  { %v4837_v51 = vmax.f32 %v3675_v10, 0.0  ;;  %v4841_v50 = vmax.f32 %v3678_v11, 0.0  ;;  %v4853_v8 = vmax.f32 %v3686_v17, 0.0  ;;  %v4861_v9 = vmax.f32 %v3690_v22, 0.0 }
  0xb2   :  { %v4873_v10 = vmax.f32 %v3695_v25, 0.0  ;;  %v4877_v11 = vmax.f32 %v5716_v7, 0.0  ;;  %v4881_v16 = vmax.f32 %v5718_v15, 0.0  ;;  %v4885_v17 = vmax.f32 %v5719_v12, 0.0 }
  0xb3   :  { %v5720_v18 = vunpack.c.l.bf16 %v4730_v20  ;;  %v5721_v13 = vunpack.c.h.bf16 %v4730_v20  ;;  %v5722_v14 = vunpack.c.l.bf16 %v4732_v21  ;;  %v5723_v25 = vunpack.c.h.bf16 %v4732_v21 }
  0xb4   :  { %5715 = vst [vmem:[#allocation26_spill] sm:$0xff] %v4873_v10  ;;  %5717 = vst [vmem:[#allocation27_spill] sm:$0xff] %v4877_v11  ;;  %v5725_v19 = vunpack.c.l.bf16 %v4738_v26  ;;  %v5727_v15 = vunpack.c.l.bf16 %v4740_v27  ;;  %v5728_v20 = vunpack.c.h.bf16 %v4740_v27  ;;  %v5730_v21 = vunpack.c.h.bf16 %v4742_v28 }
  0xb5   :  { %v4889_v22 = vmax.f32 %v5720_v18, 0.0  ;;  %v4893_v23 = vmax.f32 %v5721_v13, 0.0  ;;  %v4897_v24 = vmax.f32 %v5722_v14, 0.0  ;;  %v4901_v63 = vmax.f32 %v5723_v25, 0.0 }
  0xb6   :  { %v4905_v7 = vmax.f32 %v5725_v19, 0.0  ;;  %v4909_v12 = vmax.f32 %v5727_v15, 0.0  ;;  %v4913_v18 = vmax.f32 %v5728_v20, 0.0  ;;  %v5729_v13 = vunpack.c.l.bf16 %v4742_v28 }
  0xb7   :  { %5724 = vst [vmem:[#allocation28_spill] sm:$0xff] %v4901_v63  ;;  %v4921_v25 = vmax.f32 %v5730_v21, 0.0  ;;  %v5731_v26 = vunpack.c.l.bf16 %v4748_v33  ;;  %v5732_v56 = vunpack.c.h.bf16 %v4748_v33  ;;  %v5734_v27 = vunpack.c.l.bf16 %v4750_v34 }
  0xb8   :  { %5726 = vst [vmem:[#allocation29_spill] sm:$0xff] %v4905_v7  ;;  %v4917_v14 = vmax.f32 %v5729_v13, 0.0  ;;  %v5736_v7 = vunpack.c.l.bf16 %v4752_v35  ;;  %v4939_v63 = vmax.f32 %v3735_v57, 0.0  ;;  %v4941_v28 = vmax.f32 %v3738_v58, 0.0 }
  0xb9   :  { %v4925_v19 = vmax.f32 %v5731_v26, 0.0  ;;  %v4929_v15 = vmax.f32 %v5732_v56, 0.0  ;;  %v4933_v20 = vmax.f32 %v5734_v27, 0.0  ;;  %v4943_v21 = vmax.f32 %v3739_v59, 0.0 }
  0xba   :  { %v4937_v13 = vmax.f32 %v5736_v7, 0.0  ;;  %v4945_v26 = vmax.f32 %v3742_v60, 0.0  ;;  %v4947_v11 = vmax.f32 %v3743_v0, 0.0  ;;  %v4949_v33 = vmax.f32 %v3746_v3, 0.0 }
  0xbb   :  { %5733 = vst [vmem:[#allocation30_spill] sm:$0xff] %v4929_v15  ;;  %5735 = vst [vmem:[#allocation31_spill] sm:$0xff] %v4933_v20  ;;  %v4951_v56 = vmax.f32 %v3750_v53, 0.0  ;;  %v4953_v34 = vmax.f32 %v3751_v52, 0.0  ;;  %v4955_v27 = vmax.f32 %v3754_v46, 0.0  ;;  %v4957_v35 = vmax.f32 %v3755_v45, 0.0 }
  0xbc   :  { %5737 = vst [vmem:[#allocation32_spill] sm:$0xff] %v4947_v11  ;;  %5738 = vst [vmem:[#allocation33_spill] sm:$0xff] %v4949_v33  ;;  %v4959_v57 = vmax.f32 %v3758_v44, 0.0  ;;  %v4961_v58 = vmax.f32 %v3759_v41, 0.0  ;;  %v4963_v59 = vmax.f32 %v3762_v42, 0.0  ;;  %v4965_v60 = vmax.f32 %v3766_v43, 0.0 }
  0xbd   :  { %v4967_v0 = vmax.f32 %v3767_v47, 0.0  ;;  %v4969_v3 = vmax.f32 %v3770_v39, 0.0  ;;  %v4971_v53 = vmax.f32 %v3771_v38, 0.0  ;;  %v4973_v52 = vmax.f32 %v3774_v37, 0.0 }
  0xbe   :  { %5739 = vst [vmem:[#allocation34_spill] sm:$0xff] %v4961_v58  ;;  %5740 = vst [vmem:[#allocation35_spill] sm:$0xff] %v4963_v59  ;;  %v4975_v46 = vmax.f32 %v3775_v36, 0.0  ;;  %v4977_v45 = vmax.f32 %v3778_v48, 0.0  ;;  %v4979_v44 = vmax.f32 %v3782_v32, 0.0  ;;  %v4981_v41 = vmax.f32 %v3783_v49, 0.0 }
  0xbf   :  { %5741 = vst [vmem:[#allocation36_spill] sm:$0xff] %v4965_v60  ;;  %5742 = vst [vmem:[#allocation37_spill] sm:$0xff] %v4967_v0  ;;  %v4983_v42 = vmax.f32 %v3786_v54, 0.0  ;;  %v4985_v43 = vmax.f32 %v3787_v31, 0.0  ;;  %v4987_v47 = vmax.f32 %v3790_v55, 0.0  ;;  %v337_v38 = vsel %vm336_vm1, %v4825_v29, 0.0 }
  0xc0   :  { %5743 = vst [vmem:[#allocation38_spill] sm:$0xff] %v4975_v46  ;;  %5744 = vst [vmem:[#allocation39_spill] sm:$0xff] %v4977_v45  ;;  %v338_v37 = vsel %vm336_vm1, %v4829_v61, 0.0  ;;  %v340_v36 = vsel %vm336_vm1, %v4833_v62, 0.0  ;;  %v4995_v39 = vmax.f32 %v3791_v30, 0.0  ;;  %v4999_v48 = vsel %vm336_vm1, %v4837_v51, 0.0 }
  0xc1   :  { %5745 = vst [vmem:[#allocation40_spill] sm:$0xff] %v4979_v44  ;;  %5746 = vst [vmem:[#allocation41_spill] sm:$0xff] %v4983_v42  ;;  %v339_v32 = vadd.f32 %v338_v37, %v337_v38  ;;  %v352_v31 = vsel %vm336_vm1, %v4853_v8, 0.0  ;;  %v5005_v49 = vsel %vm336_vm1, %v4841_v50, 0.0  ;;  %v353_v54 = vsel %vm336_vm1, %v4857_v2, 0.0 }
  0xc2   :  { %5747 = vst [vmem:[#allocation42_spill] sm:$0xff] %v4995_v39  ;;  %5748 = vst [vmem:[#allocation43_spill] sm:$0xff] %v4999_v48  ;;  %v355_v55 = vsel %vm336_vm1, %v4861_v9, 0.0  ;;  %v5013_v30 = vsel %vm336_vm1, %v4865_v5, 0.0  ;;  %v354_v38 = vadd.f32 %v353_v54, %v352_v31  ;;  %v367_v37 = vsel %vm336_vm1, %v4881_v16, 0.0 }
  0xc3   :  { %5749 = vst [vmem:[#allocation44_spill] sm:$0xff] %v5005_v49  ;;  %5750 = vst [vmem:[#allocation45_spill] sm:$0xff] %v5013_v30  ;;  %v341_v7 = vadd.f32 %v340_v36, %v339_v32  ;;  %v368_v39 = vsel %vm336_vm1, %v4885_v17, 0.0  ;;  %v5021_v45 = vsel %vm336_vm1, %v4869_v6, 0.0  ;;  %v370_v46 = vsel %vm336_vm1, %v4889_v22, 0.0 }
  0xc4   :  { %5751 = vst [vmem:[#allocation46_spill] sm:$0xff] %v5021_v45  ;;  %v369_v59 = vadd.f32 %v368_v39, %v367_v37  ;;  %v5027_v33 = vsel %vm336_vm1, %v4893_v23, 0.0  ;;  %v356_v32 = vadd.f32 %v355_v55, %v354_v38  ;;  %v382_v31 = vsel %vm336_vm1, %v4909_v12, 0.0 }
  0xc5   :  { %5752 = vst [vmem:[#allocation47_spill] sm:$0xff] %v5027_v33  ;;  %v343_v36 = vadd.f32 %v4999_v48, %v341_v7  ;;  %v383_v54 = vsel %vm336_vm1, %v4913_v18, 0.0  ;;  %v5036_v39 = vsel %vm336_vm1, %v4897_v24, 0.0  ;;  %v385_v20 = vsel %vm336_vm1, %v4917_v14, 0.0 }
  0xc6   :  { %v371_v58 = vadd.f32 %v370_v46, %v369_v59  ;;  %5753 = vst [vmem:[#allocation48_spill] sm:$0xff] %v5036_v39  ;;  %v384_v37 = vadd.f32 %v383_v54, %v382_v31  ;;  %v358_v7 = vadd.f32 %v5013_v30, %v356_v32  ;;  %v5044_v55 = vsel %vm336_vm1, %v4921_v25, 0.0 }
  0xc7   :  { %v345_v11 = vadd.f32 %v5005_v49, %v343_v36  ;;  %5754 = vst [vmem:[#allocation49_spill] sm:$0xff] %v5044_v55  ;;  %v397_v38 = vsel %vm336_vm1, %v4937_v13, 0.0  ;;  %v398_v31 = vsel %vm336_vm1, %v4939_v63, 0.0  ;;  %v400_v54 = vsel %vm336_vm1, %v4941_v28, 0.0 }
  0xc8   :  { %v373_v59 = vadd.f32 %v5027_v33, %v371_v58  ;;  %v386_v46 = vadd.f32 %v385_v20, %v384_v37  ;;  %v360_v36 = vadd.f32 %v5021_v45, %v358_v7  ;;  %v5056_v32 = vsel %vm336_vm1, %v4925_v19, 0.0 }
  0xc9   :  { %v346_v15 = vrot.slane %v345_v11, 4  ;;  %5755 = vst [vmem:[#allocation50_spill] sm:$0xff] %v5056_v32  ;;  %v399_v10 = vadd.f32 %v398_v31, %v397_v38  ;;  %v5062_v20 = vsel %vm336_vm1, %v4943_v21, 0.0  ;;  %v412_v58 = vsel %vm336_vm1, %v4951_v56, 0.0 }
  0xca   :  { %v375_v30 = vadd.f32 %v5036_v39, %v373_v59  ;;  %v388_v1 = vadd.f32 %v5044_v55, %v386_v46  ;;  %5756 = vst [vmem:[#allocation51_spill] sm:$0xff] %v5062_v20  ;;  %v361_v33 = vrot.slane %v360_v36, 4  ;;  %v413_v7 = vsel %vm336_vm1, %v4953_v34, 0.0 }
  0xcb   :  { %v347_v37 = vadd.f32 %v346_v15, %v345_v11  ;;  %v401_v4 = vadd.f32 %v400_v54, %v399_v10  ;;  %v414_v31 = vadd.f32 %v413_v7, %v412_v58  ;;  %v415_v59 = vsel %vm336_vm1, %v4955_v27, 0.0 }
  0xcc   :  { %v376_v45 = vrot.slane %v375_v30, 4  ;;  %v390_v38 = vadd.f32 %v5056_v32, %v388_v1  ;;  %v362_v55 = vadd.f32 %v361_v33, %v360_v36  ;;  %v5074_v49 = vsel %vm336_vm1, %v4945_v26, 0.0 }
  0xcd   :  { %v348_v46 = vrot.slane %v347_v37, 2  ;;  %v403_v39 = vadd.f32 %v5062_v20, %v401_v4  ;;  %5757 = vst [vmem:[#allocation52_spill] sm:$0xff] %v5074_v49  ;;  %v416_v15 = vadd.f32 %v415_v59, %v414_v31  ;;  %v5078_v54 = vsel %vm336_vm1, %v4957_v35, 0.0 }
  0xce   :  { %v377_v11 = vadd.f32 %v376_v45, %v375_v30  ;;  %v391_v10 = vrot.slane %v390_v38, 4  ;;  %5758 = vst [vmem:[#allocation53_spill] sm:$0xff] %v5078_v54  ;;  %v363_v58 = vrot.slane %v362_v55, 2  ;;  %v427_v33 = vsel %vm336_vm1, %v4965_v60, 0.0  ;;  %v3960_v60 = vld [vmem:[#allocation10 + $0x1b4] ss:$24 sps:$4 sm:$0xff]  }
  0xcf   :  { %v349_v1 = vadd.f32 %v348_v46, %v347_v37  ;;  %v405_v7 = vadd.f32 %v5074_v49, %v403_v39  ;;  %v418_v20 = vadd.f32 %v5078_v54, %v416_v15  ;;  %v428_v45 = vsel %vm336_vm1, %v4967_v0, 0.0  ;;  %v3954_v46 = vld [vmem:[#allocation10 + $0x184] ss:$24 sps:$4 sm:$0xff]   ;;  %v3959_v15 = vld [vmem:[#allocation10 + $0x180] ss:$24 sps:$4 sm:$0xff]  }
  0xd0   :  { %v378_v36 = vrot.slane %v377_v11, 2  ;;  %v392_v4 = vadd.f32 %v391_v10, %v390_v38  ;;  %v364_v30 = vadd.f32 %v363_v58, %v362_v55  ;;  %v5088_v59 = vsel %vm336_vm1, %v4959_v57, 0.0  ;;  %v3958_v10 = vld [vmem:[#allocation10 + $0x18c] ss:$24 sps:$4 sm:$0xff]   ;;  %1479 = vmatprep.subr.bf16.mxu1 %v3954_v46 }
  0xd1   :  { %v406_v31 = vrot.slane %v405_v7, 4  ;;  %5759 = vst [vmem:[#allocation54_spill] sm:$0xff] %v5088_v59  ;;  %v429_v37 = vadd.f32 %v428_v45, %v427_v33  ;;  %v420_v49 = vadd.f32 %v5088_v59, %v418_v20  ;;  %v430_v38 = vsel %vm336_vm1, %v4969_v3, 0.0  ;;  %1520 = vmatprep.subr.bf16.mxu0 %v3958_v10  ;;  %1480 = vmatpush1.bf16.msra.mxu1 %v3959_v15 }
  0xd2   :  { %v379_v32 = vadd.f32 %v378_v36, %v377_v11  ;;  %v393_v39 = vrot.slane %v392_v4, 2  ;;  %v5760_v54 = vunpack.c.l.bf16 %v4802_v40  ;;  %v350_v55 = vrot.slane %v349_v1, 1  ;;  %1481 = vmatprep.subr.bf16.mxu1 %v3960_v60 }
  0xd3   :  { %v407_v58 = vadd.f32 %v406_v31, %v405_v7  ;;  %v431_v0 = vadd.f32 %v430_v38, %v429_v37  ;;  %v365_v33 = vrot.slane %v364_v30, 1  ;;  %v421_v11 = vrot.slane %v420_v49, 4  ;;  %v3966_v37 = vld [vmem:[#allocation10 + $0x1e4] ss:$24 sps:$4 sm:$0xff]  }
  0xd4   :  { %v5095_v48 = vmax.f32 %v5760_v54, 0.0  ;;  %v394_v45 = vadd.f32 %v393_v39, %v392_v4  ;;  %v5099_v20 = vsel %vm336_vm1, %v4971_v53, 0.0  ;;  %v380_v36 = vrot.slane %v379_v32, 1  ;;  %v3965_v54 = vld [vmem:[#allocation10 + $0x1b0] ss:$24 sps:$4 sm:$0xff]  }
  0xd5   :  { %5762 = vst [vmem:[#allocation56_spill] sm:$0xff] %v5099_v20  ;;  %v408_v59 = vrot.slane %v407_v58, 2  ;;  %v433_v40 = vadd.f32 %v5099_v20, %v431_v0  ;;  %v422_v7 = vadd.f32 %v421_v11, %v420_v49  ;;  %v5104_v31 = vsel %vm336_vm1, %v4973_v52, 0.0  ;;  %v3971_v0 = vld [vmem:[#allocation10 + $0x1e0] ss:$24 sps:$4 sm:$0xff]   ;;  %1482 = vmatpush1.bf16.msra.mxu1 %v3965_v54 }
  0xd6   :  { %5761 = vst [vmem:[#allocation55_spill] sm:$0xff] %v5095_v48  ;;  %v395_v48 = vrot.slane %v394_v45, 1  ;;  %5763 = vst [vmem:[#allocation57_spill] sm:$0xff] %v5104_v31  ;;  %v442_v4 = vsel %vm336_vm1, %v4979_v44, 0.0  ;;  %v443_v38 = vsel %vm336_vm1, %v4981_v41, 0.0  ;;  %v445_v60 = vsel %vm336_vm1, %v4983_v42, 0.0  ;;  %1483 = vmatprep.subr.bf16.mxu1 %v3966_v37 }
  0xd7   :  { %v409_v46 = vadd.f32 %v408_v59, %v407_v58  ;;  %v435_v39 = vadd.f32 %v5104_v31, %v433_v40  ;;  %v5113_v10 = vadd.f32 %v350_v55, %v349_v1  ;;  %v5115_v49 = vadd.f32 %v365_v33, %v364_v30  ;;  %v3972_v30 = vld [vmem:[#allocation10 + $0x214] ss:$24 sps:$4 sm:$0xff]  }
  0xd8   :  { %v423_v15 = vrot.slane %v422_v7, 2  ;;  %v444_v11 = vadd.f32 %v443_v38, %v442_v4  ;;  %v5117_v20 = vadd.f32 %v380_v36, %v379_v32  ;;  %v5119_v44 = vadd.f32 %v395_v48, %v394_v45  ;;  %v3977_v45 = vld [vmem:[#allocation10 + $0x210] ss:$24 sps:$4 sm:$0xff]  }
  0xd9   :  { %v410_v59 = vrot.slane %v409_v46, 1  ;;  %v436_v58 = vrot.slane %v435_v39, 4  ;;  %v5123_v42 = vsel %vm336_vm1, %v4985_v43, 0.0  ;;  %v5127_v1 = vsel %vm336_vm1, %v4987_v47, 0.0  ;;  %1484 = vmatpush1.bf16.msra.mxu1 %v3971_v0 }
  0xda   :  { %v424_v40 = vadd.f32 %v423_v15, %v422_v7  ;;  %v446_v31 = vadd.f32 %v445_v60, %v444_v11  ;;  %v497_v32 = vrot.slane %v4825_v29, 3  ;;  %v498_v48 = vrot.slane %v4829_v61, 3  ;;  %1485 = vmatprep.subr.bf16.mxu1 %v3972_v30 }
  0xdb   :  { %v437_v55 = vadd.f32 %v436_v58, %v435_v39  ;;  %v499_v33 = vrot.slane %v4833_v62, 3  ;;  %v5132_v36 = vadd.f32 %v410_v59, %v409_v46  ;;  %v500_v4 = vrot.slane %v4837_v51, 3 }
  0xdc   :  { %v425_v54 = vrot.slane %v424_v40, 1  ;;  %v448_v7 = vadd.f32 %v5123_v42, %v446_v31  ;;  %v501_v38 = vrot.slane %v4841_v50, 3  ;;  %v502_v39 = vrot.slane %v4853_v8, 3  ;;  %v3978_v31 = vld [vmem:[#allocation10 + $0x244] ss:$24 sps:$4 sm:$0xff]  }
  0xdd   :  { %5764 = vst [vmem:[#allocation58_spill] sm:$0xff] %v5132_v36  ;;  %v438_v37 = vrot.slane %v437_v55, 2  ;;  %v503_v29 = vrot.slane %v4857_v2, 3  ;;  %v504_v62 = vrot.slane %v4861_v9, 3  ;;  %v505_v46 = vrot.slane %v4865_v5, 3  ;;  %1486 = vmatpush1.bf16.msra.mxu1 %v3977_v45  ;;  %v5806_v36 = vld [vmem:[#allocation33_spill] sm:$0xff] }
  0xde   :  { %v450_v61 = vadd.f32 %v5127_v1, %v448_v7  ;;  %v506_v60 = vrot.slane %v4869_v6, 3  ;;  %v5143_v15 = vadd.f32 %v425_v54, %v424_v40  ;;  %v507_v0 = vrot.slane %v4881_v16, 3  ;;  %v3983_v9 = vld [vmem:[#allocation10 + $0x240] ss:$24 sps:$4 sm:$0xff]   ;;  %1487 = vmatprep.subr.bf16.mxu1 %v3978_v31 }
  0xdf   :  { %v439_v51 = vadd.f32 %v438_v37, %v437_v55  ;;  %v508_v50 = vrot.slane %v4885_v17, 3  ;;  %v509_v2 = vrot.slane %v4889_v22, 3  ;;  %v510_v11 = vrot.slane %v4893_v23, 3  ;;  %v5767_v7 = vld [vmem:[#allocation36_spill] sm:$0xff] }
  0xe0   :  { %5765 = vst [vmem:[#allocation59_spill] sm:$0xff] %v5143_v15  ;;  %v451_v8 = vrot.slane %v450_v61, 4  ;;  %v511_v59 = vrot.slane %v4897_v24, 3  ;;  %v512_v6 = vrot.slane %v4909_v12, 3  ;;  %v513_v58 = vrot.slane %v4913_v18, 3 }
  0xe1   :  { %v440_v5 = vrot.slane %v439_v51, 1  ;;  %v514_v40 = vrot.slane %v4917_v14, 3  ;;  %v515_v17 = vrot.slane %v4921_v25, 3  ;;  %v516_v30 = vrot.slane %v4925_v19, 3  ;;  %1488 = vmatpush1.bf16.msra.mxu1 %v3983_v9 }
  0xe2   :  { %v452_v16 = vadd.f32 %v451_v8, %v450_v61  ;;  %v517_v22 = vrot.slane %v4937_v13, 3  ;;  %v518_v24 = vrot.slane %v4939_v63, 3  ;;  %v519_v55 = vrot.slane %v4941_v28, 3  ;;  %v5768_v28 = vld [vmem:[#allocation37_spill] sm:$0xff] }
  0xe3   :  { %v5156_v23 = vadd.f32 %v440_v5, %v439_v51  ;;  %v520_v12 = vrot.slane %v4943_v21, 3  ;;  %v521_v18 = vrot.slane %v4945_v26, 3  ;;  %v522_v14 = vrot.slane %v4951_v56, 3  ;;  %v5770_v5 = vld [vmem:[#allocation41_spill] sm:$0xff] }
  0xe4   :  { %v453_v45 = vrot.slane %v452_v16, 2  ;;  %v523_v54 = vrot.slane %v4953_v34, 3  ;;  %v524_v25 = vrot.slane %v4955_v27, 3  ;;  %v525_v19 = vrot.slane %v4957_v35, 3  ;;  %v5769_v34 = vld [vmem:[#allocation40_spill] sm:$0xff] }
  0xe5   :  { %5766 = vst [vmem:[#allocation60_spill] sm:$0xff] %v5156_v23  ;;  %v577_v9 = vsel %vm336_vm1, %v497_v32, 0.0  ;;  %v592_v31 = vsel %vm336_vm1, %v502_v39, 0.0  ;;  %v593_v56 = vsel %vm336_vm1, %v503_v29, 0.0  ;;  %v5185_v51 = vsel %vm336_vm1, %v500_v4, 0.0 }
  0xe6   :  { %v5168_v37 = vadd.f32 %v453_v45, %v452_v16  ;;  %v578_v16 = vsel %vm336_vm1, %v498_v48, 0.0  ;;  %v580_v45 = vsel %vm336_vm1, %v499_v33, 0.0  ;;  %v5188_v32 = vsel %vm336_vm1, %v501_v38, 0.0 }
  0xe7   :  { %v579_v21 = vadd.f32 %v578_v16, %v577_v9  ;;  %v594_v13 = vadd.f32 %v593_v56, %v592_v31  ;;  %v595_v63 = vsel %vm336_vm1, %v504_v62, 0.0  ;;  %v5192_v48 = vsel %vm336_vm1, %v505_v46, 0.0 }
  0xe8   :  { %v455_v61 = vrot.slane %v5168_v37, 1  ;;  %v607_v33 = vsel %vm336_vm1, %v507_v0, 0.0  ;;  %v608_v9 = vsel %vm336_vm1, %v508_v50, 0.0  ;;  %v5197_v29 = vsel %vm336_vm1, %v506_v60, 0.0 }
  0xe9   :  { %v581_v8 = vadd.f32 %v580_v45, %v579_v21  ;;  %v596_v39 = vadd.f32 %v595_v63, %v594_v13  ;;  %v609_v4 = vadd.f32 %v608_v9, %v607_v33  ;;  %v610_v16 = vsel %vm336_vm1, %v509_v2, 0.0 }
  0xea   :  { %v5202_v31 = vsel %vm336_vm1, %v510_v11, 0.0  ;;  %v622_v62 = vsel %vm336_vm1, %v512_v6, 0.0  ;;  %v623_v46 = vsel %vm336_vm1, %v513_v58, 0.0  ;;  %v625_v13 = vsel %vm336_vm1, %v514_v40, 0.0 }
  0xeb   :  { %v583_v38 = vadd.f32 %v5185_v51, %v581_v8  ;;  %v598_v0 = vadd.f32 %v5192_v48, %v596_v39  ;;  %v611_v21 = vadd.f32 %v610_v16, %v609_v4  ;;  %v624_v50 = vadd.f32 %v623_v46, %v622_v62 }
  0xec   :  { %v5210_v63 = vsel %vm336_vm1, %v511_v59, 0.0  ;;  %v5213_v2 = vsel %vm336_vm1, %v515_v17, 0.0  ;;  %v637_v11 = vsel %vm336_vm1, %v517_v22, 0.0  ;;  %v638_v8 = vsel %vm336_vm1, %v518_v24, 0.0 }
  0xed   :  { %v585_v60 = vadd.f32 %v5188_v32, %v583_v38  ;;  %v600_v6 = vadd.f32 %v5197_v29, %v598_v0  ;;  %v613_v58 = vadd.f32 %v5202_v31, %v611_v21  ;;  %v626_v56 = vadd.f32 %v625_v13, %v624_v50 }
  0xee   :  { %v5220_v40 = vsel %vm336_vm1, %v516_v30, 0.0  ;;  %v639_v33 = vadd.f32 %v638_v8, %v637_v11  ;;  %v640_v59 = vsel %vm336_vm1, %v519_v55, 0.0  ;;  %v5226_v22 = vsel %vm336_vm1, %v520_v12, 0.0 }
  0xef   :  { %v586_v45 = vrot.slane %v585_v60, 4  ;;  %v601_v9 = vrot.slane %v600_v6, 4  ;;  %v615_v17 = vadd.f32 %v5210_v63, %v613_v58  ;;  %v628_v39 = vadd.f32 %v5213_v2, %v626_v56 }
  0xf0   :  { %v641_v16 = vadd.f32 %v640_v59, %v639_v33  ;;  %v652_v38 = vsel %vm336_vm1, %v522_v14, 0.0  ;;  %v653_v24 = vsel %vm336_vm1, %v523_v54, 0.0  ;;  %v5235_v50 = vsel %vm336_vm1, %v521_v18, 0.0 }
  0xf1   :  { %v587_v4 = vadd.f32 %v586_v45, %v585_v60  ;;  %v602_v62 = vadd.f32 %v601_v9, %v600_v6  ;;  %v616_v30 = vrot.slane %v615_v17, 4  ;;  %v630_v46 = vadd.f32 %v5220_v40, %v628_v39 }
  0xf2   :  { %v654_v0 = vadd.f32 %v653_v24, %v652_v38  ;;  %v643_v21 = vadd.f32 %v5226_v22, %v641_v16  ;;  %v655_v12 = vsel %vm336_vm1, %v524_v25, 0.0  ;;  %v5244_v58 = vsel %vm336_vm1, %v525_v19, 0.0 }
  0xf3   :  { %v588_v55 = vrot.slane %v587_v4, 2  ;;  %v603_v14 = vrot.slane %v602_v62, 2  ;;  %v617_v13 = vadd.f32 %v616_v30, %v615_v17  ;;  %v631_v54 = vrot.slane %v630_v46, 4 }
  0xf4   :  { %v656_v60 = vadd.f32 %v655_v12, %v654_v0  ;;  %v645_v6 = vadd.f32 %v5235_v50, %v643_v21  ;;  %v5771_v26 = vrot.slane %v5767_v7, 3  ;;  %v5772_v59 = vrot.slane %v4959_v57, 3 }
  0xf5   :  { %v589_v11 = vadd.f32 %v588_v55, %v587_v4  ;;  %v604_v56 = vadd.f32 %v603_v14, %v602_v62  ;;  %v618_v27 = vrot.slane %v617_v13, 2  ;;  %v632_v8 = vadd.f32 %v631_v54, %v630_v46 }
  0xf6   :  { %v667_v18 = vsel %vm336_vm1, %v5771_v26, 0.0  ;;  %v658_v25 = vadd.f32 %v5244_v58, %v656_v60  ;;  %v646_v33 = vrot.slane %v645_v6, 4  ;;  %v5253_v9 = vsel %vm336_vm1, %v5772_v59, 0.0 }
  0xf7   :  { %v590_v45 = vrot.slane %v589_v11, 1  ;;  %v5773_v35 = vrot.slane %v5768_v28, 3  ;;  %v619_v17 = vadd.f32 %v618_v27, %v617_v13  ;;  %v633_v7 = vrot.slane %v632_v8, 2 }
  0xf8   :  { %v660_v39 = vadd.f32 %v5253_v9, %v658_v25  ;;  %v5774_v4 = vrot.slane %v4969_v3, 3  ;;  %v5265_v38 = vadd.f32 %v455_v61, %v5168_v37  ;;  %v536_v57 = vrot.slane %v4987_v47, 3 }
  0xf9   :  { %v668_v19 = vsel %vm336_vm1, %v5773_v35, 0.0  ;;  %v647_v24 = vadd.f32 %v646_v33, %v645_v6  ;;  %v5268_v28 = vadd.f32 %v590_v45, %v589_v11  ;;  %v605_v30 = vrot.slane %v604_v56, 1  ;;  %v5782_v35 = vld [vmem:[#allocation43_spill] sm:$0xff] }
  0xfa   :  { %v670_v16 = vsel %vm336_vm1, %v5774_v4, 0.0  ;;  %5775 = vst [vmem:[#allocation36_spill] sm:$0xff] %v5265_v38  ;;  %v669_v62 = vadd.f32 %v668_v19, %v667_v18  ;;  %v634_v46 = vadd.f32 %v633_v7, %v632_v8  ;;  %v661_v0 = vrot.slane %v660_v39, 4  ;;  %v5783_v19 = vld [vmem:[#allocation44_spill] sm:$0xff] }
  0xfb   :  { %v648_v55 = vrot.slane %v647_v24, 2  ;;  %v5776_v3 = vrot.slane %v4971_v53, 3  ;;  %v5777_v14 = vrot.slane %v5769_v34, 3  ;;  %v620_v61 = vrot.slane %v619_v17, 1  ;;  %v5784_v4 = vld [vmem:[#allocation24_spill] sm:$0xff] }
  0xfc   :  { %v671_v21 = vadd.f32 %v670_v16, %v669_v62  ;;  %v662_v47 = vadd.f32 %v661_v0, %v660_v39  ;;  %v5778_v13 = vrot.slane %v4973_v52, 3  ;;  %v5779_v60 = vrot.slane %v4981_v41, 3 }
  0xfd   :  { %v5273_v12 = vsel %vm336_vm1, %v5776_v3, 0.0  ;;  %v682_v37 = vsel %vm336_vm1, %v5777_v14, 0.0  ;;  %v649_v6 = vadd.f32 %v648_v55, %v647_v24  ;;  %v5780_v18 = vrot.slane %v5770_v5, 3  ;;  %v5786_v55 = vld [vmem:[#allocation45_spill] sm:$0xff] }
  0xfe   :  { %v5281_v54 = vsel %vm336_vm1, %v5778_v13, 0.0  ;;  %v683_v11 = vsel %vm336_vm1, %v5779_v60, 0.0  ;;  %v673_v53 = vadd.f32 %v5273_v12, %v671_v21  ;;  %v635_v27 = vrot.slane %v634_v46, 1  ;;  %v5787_v21 = vld [vmem:[#allocation46_spill] sm:$0xff]  ;;  %v5791_v60 = vld [vmem:[#allocation48_spill] sm:$0xff] }
  0xff   :  { %v684_v26 = vadd.f32 %v683_v11, %v682_v37  ;;  %v685_v34 = vsel %vm336_vm1, %v5780_v18, 0.0  ;;  %v663_v8 = vrot.slane %v662_v47, 2  ;;  %v5781_v25 = vrot.slane %v4985_v43, 3  ;;  %v5785_v43 = vld [vmem:[#allocation25_spill] sm:$0xff]  ;;  %v5788_v37 = vld [vmem:[#allocation26_spill] sm:$0xff] }
 0x100   :  { %v5296_v45 = vsel %vm336_vm1, %v536_v57, 0.0  ;;  %v650_v41 = vrot.slane %v649_v6, 1  ;;  %v675_v33 = vadd.f32 %v5281_v54, %v673_v53  ;;  %v697_v7 = vadd.f32 %v5783_v19, %v5782_v35  ;;  %v5794_v35 = vld [vmem:[#allocation29_spill] sm:$0xff] }
 0x101   :  { %v5293_v52 = vsel %vm336_vm1, %v5781_v25, 0.0  ;;  %v686_v59 = vadd.f32 %v685_v34, %v684_v26  ;;  %v5301_v5 = vadd.f32 %v605_v30, %v604_v56  ;;  %v664_v39 = vadd.f32 %v663_v8, %v662_v47  ;;  %v5789_v56 = vld [vmem:[#allocation27_spill] sm:$0xff]  ;;  %v5793_v25 = vld [vmem:[#allocation28_spill] sm:$0xff] }
 0x102   :  { %v698_v16 = vsel %vm336_vm1, %v5784_v4, 0.0  ;;  %v700_v24 = vsel %vm336_vm1, %v5785_v43, 0.0  ;;  %v676_v62 = vrot.slane %v675_v33, 4  ;;  %v710_v3 = vadd.f32 %v5787_v21, %v5786_v55  ;;  %v5790_v47 = vld [vmem:[#allocation47_spill] sm:$0xff] }
 0x103   :  { %v688_v57 = vadd.f32 %v5293_v52, %v686_v59  ;;  %v699_v0 = vadd.f32 %v698_v16, %v697_v7  ;;  %v665_v14 = vrot.slane %v664_v39, 1  ;;  %v711_v13 = vsel %vm336_vm1, %v5788_v37, 0.0  ;;  %v5795_v7 = vld [vmem:[#allocation49_spill] sm:$0xff]  ;;  %v5796_v16 = vld [vmem:[#allocation50_spill] sm:$0xff] }
 0x104   :  { %v713_v30 = vsel %vm336_vm1, %v5789_v56, 0.0  ;;  %v723_v11 = vadd.f32 %v5791_v60, %v5790_v47  ;;  %v5316_v53 = vadd.f32 %v620_v61, %v619_v17  ;;  %v5318_v26 = vadd.f32 %v635_v27, %v634_v46  ;;  %v5798_v27 = vld [vmem:[#allocation30_spill] sm:$0xff] }
 0x105   :  { %v677_v18 = vadd.f32 %v676_v62, %v675_v33  ;;  %v690_v34 = vadd.f32 %v5296_v45, %v688_v57  ;;  %v5321_v8 = vadd.f32 %v650_v41, %v649_v6  ;;  %v724_v59 = vsel %vm336_vm1, %v5793_v25, 0.0  ;;  %v5799_v6 = vld [vmem:[#allocation51_spill] sm:$0xff]  ;;  %v5800_v41 = vld [vmem:[#allocation52_spill] sm:$0xff] }
 0x106   :  { %v726_v19 = vsel %vm336_vm1, %v5794_v35, 0.0  ;;  %v736_v55 = vadd.f32 %v5796_v16, %v5795_v7  ;;  %v5329_v17 = vadd.f32 %v700_v24, %v699_v0  ;;  %v712_v46 = vadd.f32 %v711_v13, %v710_v3  ;;  %v5801_v57 = vld [vmem:[#allocation32_spill] sm:$0xff]  ;;  %v5802_v16 = vld [vmem:[#allocation31_spill] sm:$0xff]  ;;  %v5803_v3 = vld [vmem:[#allocation53_spill] sm:$0xff] }
 0x107   :  { %5792 = vst [vmem:[#allocation37_spill] sm:$0xff] %v5321_v8  ;;  %v678_v21 = vrot.slane %v677_v18, 2  ;;  %v691_v47 = vrot.slane %v690_v34, 4  ;;  %v725_v61 = vadd.f32 %v724_v59, %v723_v11  ;;  %v737_v33 = vsel %vm336_vm1, %v5798_v27, 0.0  ;;  %v5804_v13 = vld [vmem:[#allocation54_spill] sm:$0xff] }
 0x108   :  { %5797 = vst [vmem:[#allocation40_spill] sm:$0xff] %v5329_v17  ;;  %v749_v62 = vadd.f32 %v5800_v41, %v5799_v6  ;;  %v750_v60 = vsel %vm336_vm1, %v5801_v57, 0.0  ;;  %v5337_v38 = vadd.f32 %v665_v14, %v664_v39  ;;  %v738_v7 = vadd.f32 %v737_v33, %v736_v55  ;;  %v5805_v59 = vld [vmem:[#allocation34_spill] sm:$0xff]  ;;  %v5808_v55 = vld [vmem:[#allocation57_spill] sm:$0xff] }
 0x109   :  { %v679_v23 = vadd.f32 %v678_v21, %v677_v18  ;;  %v692_v15 = vadd.f32 %v691_v47, %v690_v34  ;;  %v739_v24 = vsel %vm336_vm1, %v5802_v16, 0.0  ;;  %v762_v11 = vadd.f32 %v5804_v13, %v5803_v3  ;;  %v5807_v34 = vld [vmem:[#allocation56_spill] sm:$0xff]  ;;  %v5809_v47 = vld [vmem:[#allocation38_spill] sm:$0xff]  ;;  %v5811_v3 = vld [vmem:[#allocation35_spill] sm:$0xff] }
 0x10a   :  { %v751_v0 = vadd.f32 %v750_v60, %v749_v62  ;;  %v763_v17 = vsel %vm336_vm1, %v5805_v59, 0.0  ;;  %v5345_v41 = vadd.f32 %v713_v30, %v712_v46  ;;  %v752_v39 = vsel %vm336_vm1, %v5806_v36, 0.0 }
 0x10b   :  { %v680_v8 = vrot.slane %v679_v23, 1  ;;  %v693_v6 = vrot.slane %v692_v15, 2  ;;  %v5349_v14 = vadd.f32 %v726_v19, %v725_v61  ;;  %v764_v18 = vadd.f32 %v763_v17, %v762_v11  ;;  %v5812_v61 = vld [vmem:[#allocation39_spill] sm:$0xff]  ;;  %v5813_v11 = vld [vmem:[#allocation42_spill] sm:$0xff] }
 0x10c   :  { %v775_v21 = vadd.f32 %v5808_v55, %v5807_v34  ;;  %v776_v33 = vsel %vm336_vm1, %v5809_v47, 0.0  ;;  %v5355_v60 = vadd.f32 %v739_v24, %v738_v7  ;;  %v765_v13 = vsel %vm336_vm1, %v5811_v3, 0.0  ;;  %v5814_v24 = vld [vmem:[#allocation55_spill] sm:$0xff] }
 0x10d   :  { %v694_v62 = vadd.f32 %v693_v6, %v692_v15  ;;  %v788_v30 = vadd.f32 %v5127_v1, %v5123_v42  ;;  %v5361_v46 = vadd.f32 %v752_v39, %v751_v0  ;;  %v778_v17 = vsel %vm336_vm1, %v5812_v61, 0.0 }
 0x10e   :  { %5810 = vst [vmem:[#allocation41_spill] sm:$0xff] %v5355_v60  ;;  %v777_v19 = vadd.f32 %v776_v33, %v775_v21  ;;  %v789_v34 = vsel %vm336_vm1, %v5813_v11, 0.0  ;;  %v5367_v55 = vadd.f32 %v680_v8, %v679_v23  ;;  %v791_v6 = vsel %vm336_vm1, %v5814_v24, 0.0 }
 0x10f   :  { %v695_v15 = vrot.slane %v694_v62, 1  ;;  %v790_v7 = vadd.f32 %v789_v34, %v788_v30  ;;  %v5371_v60 = vadd.f32 %v765_v13, %v764_v18  ;;  %v825_v42 = vrot.slane %v5784_v4, 3 }
 0x110   :  { %v826_v1 = vrot.slane %v5785_v43, 3  ;;  %v828_v0 = vrot.slane %v5788_v37, 3  ;;  %v5378_v21 = vadd.f32 %v778_v17, %v777_v19  ;;  %v829_v23 = vrot.slane %v5789_v56, 3 }
 0x111   :  { %v5376_v39 = vadd.f32 %v695_v15, %v694_v62  ;;  %v831_v8 = vrot.slane %v5793_v25, 3  ;;  %v5382_v33 = vadd.f32 %v791_v6, %v790_v7  ;;  %v832_v30 = vrot.slane %v5794_v35, 3 }
 0x112   :  { %v834_v18 = vrot.slane %v5798_v27, 3  ;;  %v835_v4 = vrot.slane %v5802_v16, 3  ;;  %vm985_vm2 = vcmask 1041409   ;;  %v837_v43 = vrot.slane %v5801_v57, 3 }
 0x113   :  { %v838_v37 = vrot.slane %v5806_v36, 3  ;;  %v840_v62 = vrot.slane %v5805_v59, 3  ;;  %v841_v13 = vrot.slane %v5811_v3, 3  ;;  %vm987_vm3 = vcmask 1042434  }
 0x114   :  { %v843_v56 = vrot.slane %v5809_v47, 3  ;;  %v844_v25 = vrot.slane %v5812_v61, 3  ;;  %v873_v35 = vadd.f32 %v5188_v32, %v5185_v51  ;;  %v874_v27 = vsel %vm336_vm1, %v825_v42, 0.0 }
 0x115   :  { %vm989_vm4 = vcmask 1043459   ;;  %v846_v16 = vrot.slane %v5813_v11, 3  ;;  %v886_v36 = vadd.f32 %v5197_v29, %v5192_v48  ;;  %v887_v57 = vsel %vm336_vm1, %v828_v0, 0.0 }
 0x116   :  { %v899_v59 = vadd.f32 %v5210_v63, %v5202_v31  ;;  %vm991_vm5 = vcmask 1044484   ;;  %v875_v47 = vadd.f32 %v874_v27, %v873_v35  ;;  %v876_v3 = vsel %vm336_vm1, %v826_v1, 0.0  ;;  %v5817_v35 = vld [vmem:[#allocation59_spill] sm:$0xff] }
 0x117   :  { %v900_v19 = vsel %vm336_vm1, %v831_v8, 0.0  ;;  %v912_v51 = vadd.f32 %v5220_v40, %v5213_v2  ;;  %vm993_vm6 = vcmask 1045509   ;;  %v888_v32 = vadd.f32 %v887_v57, %v886_v36  ;;  %v4293_v57 = vld [vmem:[#allocation2 + $0x78] sm:$0xff]  }
 0x118   :  { %v889_v61 = vsel %vm336_vm1, %v829_v23, 0.0  ;;  %v901_v17 = vadd.f32 %v900_v19, %v899_v59  ;;  %v913_v48 = vsel %vm336_vm1, %v834_v18, 0.0  ;;  %vm995_vm7 = vcmask 1046534   ;;  %v5818_v59 = vld [vmem:[#allocation60_spill] sm:$0xff] }
 0x119   :  { %v902_v29 = vsel %vm336_vm1, %v832_v30, 0.0  ;;  %v914_v31 = vadd.f32 %v913_v48, %v912_v51  ;;  %v925_v63 = vadd.f32 %v5235_v50, %v5226_v22  ;;  %v926_v11 = vsel %vm336_vm1, %v837_v43, 0.0  ;;  %v4294_v19 = vld [vmem:[#allocation2 + $0x98] sm:$0xff]  }
 0x11a   :  { %vm997_vm8 = vcmask 1047559   ;;  %v847_v34 = vrot.slane %v5814_v24, 3  ;;  %v5413_v2 = vadd.f32 %v876_v3, %v875_v47  ;;  %v915_v40 = vsel %vm336_vm1, %v835_v4, 0.0 }
 0x11b   :  { %v938_v15 = vadd.f32 %v5253_v9, %v5244_v58  ;;  %v5418_v7 = vadd.f32 %v889_v61, %v888_v32  ;;  %v927_v6 = vadd.f32 %v926_v11, %v925_v63  ;;  %v928_v42 = vsel %vm336_vm1, %v838_v37, 0.0  ;;  %v4295_v32 = vld [vmem:[#allocation2 + $0xb8] sm:$0xff]  }
 0x11c   :  { %v939_v1 = vsel %vm336_vm1, %v840_v62, 0.0  ;;  %v5422_v22 = vadd.f32 %v902_v29, %v901_v17  ;;  %v5425_v50 = vsel %vm336_vm1, %v841_v13, 0.0  ;;  %v951_v24 = vadd.f32 %v5281_v54, %v5273_v12  ;;  %v5816_v62 = vld [vmem:[#allocation37_spill] sm:$0xff]  ;;  %v4290_v13 = vld [vmem:[#allocation2 + $0x18] sm:$0xff]  }
 0x11d   :  { %v952_v0 = vsel %vm336_vm1, %v843_v56, 0.0  ;;  %v5430_v23 = vadd.f32 %v915_v40, %v914_v31  ;;  %v5433_v58 = vsel %vm336_vm1, %v844_v25, 0.0  ;;  %v964_v9 = vadd.f32 %v5296_v45, %v5293_v52  ;;  %v5819_v17 = vld [vmem:[#allocation36_spill] sm:$0xff] }
 0x11e   :  { %v965_v8 = vsel %vm336_vm1, %v846_v16, 0.0  ;;  %v5438_v30 = vadd.f32 %v928_v42, %v927_v6  ;;  %v5440_v18 = vadd.f32 %v939_v1, %v938_v15  ;;  %v986_v12 = vsel %vm985_vm2, %v5115_v49, %v5113_v10  ;;  %v4296_v29 = vld [vmem:[#allocation2 + $0xd8] sm:$0xff]  }
 0x11f   :  { %v1008_v54 = vsel %vm985_vm2, %v5301_v5, %v5268_v28  ;;  %v5449_v4 = vsel %vm336_vm1, %v847_v34, 0.0  ;;  %v988_v52 = vsel %vm987_vm3, %v5117_v20, %v986_v12  ;;  %vm1051_vm9 = vcmask 64512   ;;  %v5815_v28 = vld [vmem:[#allocation58_spill] sm:$0xff]  ;;  %v4297_v63 = vld [vmem:[#allocation2 + $0xf8] sm:$0xff]  }
 0x120   :  { %v1009_v45 = vsel %vm987_vm3, %v5316_v53, %v1008_v54  ;;  %v5455_v43 = vadd.f32 %v952_v0, %v951_v24  ;;  %v5457_v37 = vadd.f32 %v965_v8, %v964_v9  ;;  %v990_v10 = vsel %vm989_vm4, %v5119_v44, %v988_v52  ;;  %v4291_v53 = vld [vmem:[#allocation2 + $0x38] sm:$0xff]  }
 0x121   :  { %v1010_v49 = vsel %vm989_vm4, %v5318_v26, %v1009_v45  ;;  %v992_v5 = vsel %vm991_vm5, %v5815_v28, %v990_v10  ;;  %v3683_v56 = vunpack.c.h.bf16 %v4290_v13  ;;  %v3699_v25 = vunpack.c.h.bf16 %v4291_v53  ;;  %v4292_v44 = vld [vmem:[#allocation2 + $0x58] sm:$0xff]  }
 0x122   :  { %v1011_v20 = vsel %vm991_vm5, %v5816_v62, %v1010_v49  ;;  %v994_v27 = vsel %vm993_vm6, %v5817_v35, %v992_v5  ;;  %v3715_v36 = vunpack.c.h.bf16 %v4292_v44  ;;  %v3731_v26 = vunpack.c.h.bf16 %v4293_v57  ;;  %v5820_v12 = vld [vmem:[#allocation40_spill] sm:$0xff]  ;;  %v5821_v49 = vld [vmem:[#allocation41_spill] sm:$0xff] }
 0x123   :  { %v1012_v16 = vsel %vm993_vm6, %v5337_v38, %v1011_v20  ;;  %v996_v47 = vsel %vm995_vm7, %v5818_v59, %v994_v27  ;;  %v3747_v51 = vunpack.c.h.bf16 %v4294_v19  ;;  %v3763_v61 = vunpack.c.h.bf16 %v4295_v32 }
 0x124   :  { %v1013_v3 = vsel %vm995_vm7, %v5367_v55, %v1012_v16  ;;  %v998_v48 = vsel %vm997_vm8, %v5819_v17, %v996_v47  ;;  %v3779_v31 = vunpack.c.h.bf16 %v4296_v29  ;;  %v3795_v11 = vunpack.c.h.bf16 %v4297_v63 }
 0x125   :  { %v1014_v38 = vsel %vm997_vm8, %v5376_v39, %v1013_v3  ;;  %v5479_v40 = vmax.f32 %v3683_v56, 0.0  ;;  %v5481_v15 = vmax.f32 %v3699_v25, 0.0  ;;  %v5483_v55 = vmax.f32 %v3715_v36, 0.0 }
 0x126   :  { %v1048_v34 = vpack.c.bf16 %v1014_v38, %v998_v48  ;;  %v5485_v6 = vmax.f32 %v3731_v26, 0.0  ;;  %v5487_v42 = vmax.f32 %v3747_v51, 0.0  ;;  %v5489_v1 = vmax.f32 %v3763_v61, 0.0 }
 0x127   :  { %v5491_v24 = vmax.f32 %v3779_v31, 0.0  ;;  %v5494_v39 = vmax.f32 %v3795_v11, 0.0  ;;  %v702_v0 = vsel %vm336_vm1, %v5479_v40, 0.0  ;;  %v715_v9 = vsel %vm336_vm1, %v5481_v15, 0.0 }
 0x128   :  { %3898 = vmatprep.mubr.msk.bf16.mxu0 %vm1051_vm9, %v1048_v34  ;;  %v728_v8 = vsel %vm336_vm1, %v5483_v55, 0.0  ;;  %v703_v54 = vadd.f32 %v702_v0, %v5820_v12  ;;  %v716_v52 = vadd.f32 %v715_v9, %v5345_v41  ;;  %v741_v10 = vsel %vm336_vm1, %v5485_v6, 0.0 }
 0x129   :  { %v729_v45 = vadd.f32 %v728_v8, %v5349_v14  ;;  %v742_v28 = vadd.f32 %v741_v10, %v5821_v49  ;;  %v754_v5 = vsel %vm336_vm1, %v5487_v42, 0.0  ;;  %v767_v62 = vsel %vm336_vm1, %v5489_v1, 0.0 }
 0x12a   :  { %v780_v20 = vsel %vm336_vm1, %v5491_v24, 0.0  ;;  %v704_v13 = vrot.slane %v703_v54, 4  ;;  %v717_v56 = vrot.slane %v716_v52, 4  ;;  %v755_v41 = vadd.f32 %v754_v5, %v5361_v46 }
 0x12b   :  { %v730_v53 = vrot.slane %v729_v45, 4  ;;  %v743_v14 = vrot.slane %v742_v28, 4  ;;  %v768_v25 = vadd.f32 %v767_v62, %v5371_v60  ;;  %v781_v35 = vadd.f32 %v780_v20, %v5378_v21 }
 0x12c   :  { %v793_v27 = vsel %vm336_vm1, %v5494_v39, 0.0  ;;  %v705_v16 = vadd.f32 %v704_v13, %v703_v54  ;;  %v718_v44 = vadd.f32 %v717_v56, %v716_v52  ;;  %v756_v57 = vrot.slane %v755_v41, 4 }
 0x12d   :  { %v731_v36 = vadd.f32 %v730_v53, %v729_v45  ;;  %v744_v26 = vadd.f32 %v743_v14, %v742_v28  ;;  %v769_v59 = vrot.slane %v768_v25, 4  ;;  %v782_v47 = vrot.slane %v781_v35, 4 }
 0x12e   :  { %v794_v3 = vadd.f32 %v793_v27, %v5382_v33  ;;  %v706_v19 = vrot.slane %v705_v16, 2  ;;  %v719_v51 = vrot.slane %v718_v44, 2  ;;  %v757_v32 = vadd.f32 %v756_v57, %v755_v41 }
 0x12f   :  { %v732_v46 = vrot.slane %v731_v36, 2  ;;  %v745_v61 = vrot.slane %v744_v26, 2  ;;  %v770_v60 = vadd.f32 %v769_v59, %v768_v25  ;;  %v783_v17 = vadd.f32 %v782_v47, %v781_v35 }
 0x130   :  { %v795_v21 = vrot.slane %v794_v3, 4  ;;  %v707_v48 = vadd.f32 %v706_v19, %v705_v16  ;;  %v720_v38 = vadd.f32 %v719_v51, %v718_v44  ;;  %v758_v31 = vrot.slane %v757_v32, 2 }
 0x131   :  { %v733_v29 = vadd.f32 %v732_v46, %v731_v36  ;;  %v746_v63 = vadd.f32 %v745_v61, %v744_v26  ;;  %v771_v11 = vrot.slane %v770_v60, 2  ;;  %v784_v34 = vrot.slane %v783_v17, 2 }
 0x132   :  { %v796_v0 = vadd.f32 %v795_v21, %v794_v3  ;;  %v708_v9 = vrot.slane %v707_v48, 1  ;;  %v721_v8 = vrot.slane %v720_v38, 1  ;;  %v759_v33 = vadd.f32 %v758_v31, %v757_v32 }
 0x133   :  { %v734_v12 = vrot.slane %v733_v29, 1  ;;  %v747_v54 = vrot.slane %v746_v63, 1  ;;  %v5520_v52 = vadd.f32 %v771_v11, %v770_v60  ;;  %v5522_v45 = vadd.f32 %v784_v34, %v783_v17 }
 0x134   :  { %v797_v10 = vrot.slane %v796_v0, 2  ;;  %v942_v49 = vadd.f32 %v5425_v50, %v5440_v18  ;;  %v955_v28 = vadd.f32 %v5433_v58, %v5455_v43  ;;  %v968_v5 = vadd.f32 %v5449_v4, %v5457_v37 }
 0x135   :  { %v760_v62 = vrot.slane %v759_v33, 1  ;;  %v5530_v20 = vadd.f32 %v708_v9, %v707_v48  ;;  %v5532_v13 = vadd.f32 %v721_v8, %v720_v38  ;;  %v5534_v56 = vadd.f32 %v734_v12, %v733_v29 }
 0x136   :  { %v5536_v53 = vadd.f32 %v797_v10, %v796_v0  ;;  %v5538_v41 = vadd.f32 %v747_v54, %v746_v63  ;;  %v827_v14 = vrot.slane %v5479_v40, 3  ;;  %v830_v50 = vrot.slane %v5481_v15, 3 }
 0x137   :  { %v833_v58 = vrot.slane %v5483_v55, 3  ;;  %v5543_v18 = vadd.f32 %v760_v62, %v759_v33  ;;  %v773_v4 = vrot.slane %v5520_v52, 1  ;;  %v786_v43 = vrot.slane %v5522_v45, 1 }
 0x138   :  { %v836_v37 = vrot.slane %v5485_v6, 3  ;;  %v799_v25 = vrot.slane %v5536_v53, 1  ;;  %v839_v35 = vrot.slane %v5487_v42, 3  ;;  %v842_v27 = vrot.slane %v5489_v1, 3 }
 0x139   :  { %v845_v40 = vrot.slane %v5491_v24, 3  ;;  %v848_v15 = vrot.slane %v5494_v39, 3  ;;  %v878_v55 = vsel %vm336_vm1, %v827_v14, 0.0  ;;  %v891_v16 = vsel %vm336_vm1, %v830_v50, 0.0 }
 0x13a   :  { %v904_v44 = vsel %vm336_vm1, %v833_v58, 0.0  ;;  %v879_v36 = vadd.f32 %v878_v55, %v5413_v2  ;;  %v892_v6 = vadd.f32 %v891_v16, %v5418_v7  ;;  %v917_v42 = vsel %vm336_vm1, %v836_v37, 0.0 }
 0x13b   :  { %v905_v57 = vadd.f32 %v904_v44, %v5422_v22  ;;  %v918_v1 = vadd.f32 %v917_v42, %v5430_v23  ;;  %v930_v24 = vsel %vm336_vm1, %v839_v35, 0.0  ;;  %v943_v39 = vsel %vm336_vm1, %v842_v27, 0.0 }
 0x13c   :  { %v956_v26 = vsel %vm336_vm1, %v845_v40, 0.0  ;;  %v880_v59 = vrot.slane %v879_v36, 4  ;;  %v893_v47 = vrot.slane %v892_v6, 4  ;;  %v931_v19 = vadd.f32 %v930_v24, %v5438_v30 }
 0x13d   :  { %v906_v3 = vrot.slane %v905_v57, 4  ;;  %v919_v2 = vrot.slane %v918_v1, 4  ;;  %v944_v51 = vadd.f32 %v943_v39, %v942_v49  ;;  %v957_v7 = vadd.f32 %v956_v26, %v955_v28 }
 0x13e   :  { %v969_v22 = vsel %vm336_vm1, %v848_v15, 0.0  ;;  %v881_v46 = vadd.f32 %v880_v59, %v879_v36  ;;  %v894_v32 = vadd.f32 %v893_v47, %v892_v6  ;;  %v932_v23 = vrot.slane %v931_v19, 4 }
 0x13f   :  { %v907_v61 = vadd.f32 %v906_v3, %v905_v57  ;;  %v920_v60 = vadd.f32 %v919_v2, %v918_v1  ;;  %v945_v17 = vrot.slane %v944_v51, 4  ;;  %v958_v21 = vrot.slane %v957_v7, 4 }
 0x140   :  { %v970_v48 = vadd.f32 %v969_v22, %v968_v5  ;;  %v882_v38 = vrot.slane %v881_v46, 2  ;;  %v895_v29 = vrot.slane %v894_v32, 2  ;;  %v933_v63 = vadd.f32 %v932_v23, %v931_v19  ;;  %v3956_v22 = vld [vmem:[#allocation10 + $0x188] ss:$24 sps:$4 sm:$0xff]  }
 0x141   :  { %v908_v31 = vrot.slane %v907_v61, 2  ;;  %v921_v11 = vrot.slane %v920_v60, 2  ;;  %v946_v34 = vadd.f32 %v945_v17, %v944_v51  ;;  %v959_v30 = vadd.f32 %v958_v21, %v957_v7  ;;  %v3968_v23 = vld [vmem:[#allocation10 + $0x1e8] ss:$24 sps:$4 sm:$0xff]   ;;  %v3974_v17 = vld [vmem:[#allocation10 + $0x218] ss:$24 sps:$4 sm:$0xff]  }
 0x142   :  { %v971_v0 = vrot.slane %v970_v48, 4  ;;  %v883_v9 = vadd.f32 %v882_v38, %v881_v46  ;;  %v896_v8 = vadd.f32 %v895_v29, %v894_v32  ;;  %v934_v33 = vrot.slane %v933_v63, 2  ;;  %v3964_v32 = vld [vmem:[#allocation10 + $0x1bc] ss:$24 sps:$4 sm:$0xff]   ;;  %v3982_v21 = vld [vmem:[#allocation10 + $0x24c] ss:$24 sps:$4 sm:$0xff]  }
 0x143   :  { %v909_v12 = vadd.f32 %v908_v31, %v907_v61  ;;  %v922_v54 = vadd.f32 %v921_v11, %v920_v60  ;;  %v947_v10 = vrot.slane %v946_v34, 2  ;;  %v960_v49 = vrot.slane %v959_v30, 2  ;;  %v3970_v61 = vld [vmem:[#allocation10 + $0x1ec] ss:$24 sps:$4 sm:$0xff]   ;;  %v3976_v60 = vld [vmem:[#allocation10 + $0x21c] ss:$24 sps:$4 sm:$0xff]  }
 0x144   :  { %v972_v28 = vadd.f32 %v971_v0, %v970_v48  ;;  %v884_v62 = vrot.slane %v883_v9, 1  ;;  %v897_v14 = vrot.slane %v896_v8, 1  ;;  %v935_v5 = vadd.f32 %v934_v33, %v933_v63  ;;  %v3980_v48 = vld [vmem:[#allocation10 + $0x248] ss:$24 sps:$4 sm:$0xff]   ;;  %v3984_v38 = vld [vmem:[#allocation10 + $0x274] ss:$24 sps:$4 sm:$0xff]  }
 0x145   :  { %v910_v50 = vrot.slane %v909_v12, 1  ;;  %v923_v58 = vrot.slane %v922_v54, 1  ;;  %v948_v37 = vadd.f32 %v947_v10, %v946_v34  ;;  %v961_v35 = vadd.f32 %v960_v49, %v959_v30  ;;  %v3988_v29 = vld [vmem:[#allocation10 + $0x27c] ss:$24 sps:$4 sm:$0xff]   ;;  %v3986_v31 = vld [vmem:[#allocation10 + $0x278] ss:$24 sps:$4 sm:$0xff]   ;;  %1489 = vmatprep.subr.bf16.mxu1 %v3984_v38 }
 0x146   :  { %v973_v27 = vrot.slane %v972_v28, 2  ;;  %v885_v40 = vadd.f32 %v884_v62, %v883_v9  ;;  %v898_v15 = vadd.f32 %v897_v14, %v896_v8  ;;  %v936_v16 = vrot.slane %v935_v5, 1  ;;  %v3989_v63 = vld [vmem:[#allocation10 + $0x270] ss:$24 sps:$4 sm:$0xff]   ;;  %v3990_v11 = vld [vmem:[#allocation10 + $0x2a4] ss:$24 sps:$4 sm:$0xff]  }
 0x147   :  { %v911_v55 = vadd.f32 %v910_v50, %v909_v12  ;;  %v924_v44 = vadd.f32 %v923_v58, %v922_v54  ;;  %v949_v36 = vrot.slane %v948_v37, 1  ;;  %v962_v6 = vrot.slane %v961_v35, 1  ;;  %1490 = vmatpush1.bf16.msra.mxu1 %v3989_v63  ;;  %v3994_v34 = vld [vmem:[#allocation10 + $0x2ac] ss:$24 sps:$4 sm:$0xff]   ;;  %v3992_v30 = vld [vmem:[#allocation10 + $0x2a8] ss:$24 sps:$4 sm:$0xff]  }
 0x148   :  { %v974_v57 = vadd.f32 %v973_v27, %v972_v28  ;;  %v774_v42 = vadd.f32 %v773_v4, %v5520_v52  ;;  %v937_v1 = vadd.f32 %v936_v16, %v935_v5  ;;  %v1024_v24 = vsel %vm985_vm2, %v5532_v13, %v5530_v20  ;;  %v3995_v0 = vld [vmem:[#allocation10 + $0x2a0] ss:$24 sps:$4 sm:$0xff]   ;;  %1491 = vmatprep.subr.bf16.mxu1 %v3990_v11  ;;  %v3996_v9 = vld [vmem:[#allocation10 + $0x2d4] ss:$24 sps:$4 sm:$0xff]   ;;  %v4001_v33 = vld [vmem:[#allocation10 + $0x2d0] ss:$24 sps:$4 sm:$0xff]  }
 0x149   :  { %v1040_v39 = vsel %vm985_vm2, %v898_v15, %v885_v40  ;;  %v787_v26 = vadd.f32 %v786_v43, %v5522_v45  ;;  %v950_v59 = vadd.f32 %v949_v36, %v948_v37  ;;  %v1025_v3 = vsel %vm987_vm3, %v5534_v56, %v1024_v24  ;;  %v4000_v8 = vld [vmem:[#allocation10 + $0x2dc] ss:$24 sps:$4 sm:$0xff]   ;;  %v3998_v12 = vld [vmem:[#allocation10 + $0x2d8] ss:$24 sps:$4 sm:$0xff]   ;;  %v4007_v49 = vld [vmem:[#allocation10 + $0xc] ss:$24 sps:$4 sm:$0xff]  }
 0x14a   :  { %v975_v47 = vrot.slane %v974_v57, 1  ;;  %v800_v52 = vadd.f32 %v799_v25, %v5536_v53  ;;  %v963_v4 = vadd.f32 %v962_v6, %v961_v35  ;;  %v1026_v19 = vsel %vm989_vm4, %v5538_v41, %v1025_v3  ;;  %v4004_v54 = vld [vmem:[#allocation10 + $0x194] ss:$24 sps:$4 sm:$0xff]   ;;  %v3425_v28 = vld [vmem:[#allocation7] ss:$0 sm:$0xff] }
 0x14b   :  { %v1041_v20 = vsel %vm987_vm3, %v911_v55, %v1040_v39  ;;  %v1027_v2 = vsel %vm991_vm5, %v5543_v18, %v1026_v19  ;;  %v3962_v18 = vld [vmem:[#allocation10 + $0x1b8] ss:$24 sps:$4 sm:$0xff]   ;;  %1492 = vmatpush1.bf16.msra.mxu1 %v3995_v0  ;;  %v4543_v10 = vmov 0   ;;  %v3426_v14 = vld [vmem:[#allocation8] ss:$0 sm:$0xff] }
 0x14c   :  { %v976_v13 = vadd.f32 %v975_v47, %v974_v57  ;;  %v1042_v45 = vsel %vm989_vm4, %v924_v44, %v1041_v20  ;;  %v1028_v43 = vsel %vm993_vm6, %v774_v42, %v1027_v2  ;;  %1493 = vmatprep.subr.bf16.mxu1 %v3996_v9  ;;  %1511 = vmatprep.mubr.bf16.mxu1 %v4543_v10  ;;  %v4002_v39 = vld [vmem:[#allocation10 + $0x190] ss:$24 sps:$4 sm:$0xff]   ;;  %v4010_v47 = vld [vmem:[#allocation10 + $0x1c4] ss:$24 sps:$4 sm:$0xff]   ;;  %v4016_v19 = vld [vmem:[#allocation10 + $0x1f4] ss:$24 sps:$4 sm:$0xff]  }
 0x14d   :  { %v1043_v56 = vsel %vm991_vm5, %v937_v1, %v1042_v45  ;;  %v1029_v51 = vsel %vm995_vm7, %v787_v26, %v1028_v43  ;;  %v4005_v26 = vld [vmem:[#allocation10 + $0x8] ss:$24 sps:$4 sm:$0xff]   ;;  %v4013_v3 = vld [vmem:[#allocation10 + $0x3c] ss:$24 sps:$4 sm:$0xff]   ;;  %v4019_v20 = vld [vmem:[#allocation10 + $0x6c] ss:$24 sps:$4 sm:$0xff]  }
 0x14e   :  { %v1044_v53 = vsel %vm993_vm6, %v950_v59, %v1043_v56  ;;  %v1030_v25 = vsel %vm997_vm8, %v800_v52, %v1029_v51  ;;  %v4008_v52 = vld [vmem:[#allocation10 + $0x1c0] ss:$24 sps:$4 sm:$0xff]   ;;  %v4022_v45 = vld [vmem:[#allocation10 + $0x224] ss:$24 sps:$4 sm:$0xff]   ;;  %v4056_v9 = vld [vmem:[#allocation10 + $0x30] ss:$24 sps:$4 sm:$0xff]  }
 0x14f   :  { %v1045_v41 = vsel %vm995_vm7, %v963_v4, %v1044_v53  ;;  %1494 = vmatpush1.bf16.msra.mxu1 %v4001_v33  ;;  %v4011_v4 = vld [vmem:[#allocation10 + $0x38] ss:$24 sps:$4 sm:$0xff]   ;;  %v4017_v2 = vld [vmem:[#allocation10 + $0x68] ss:$24 sps:$4 sm:$0xff]   ;;  %v4025_v43 = vld [vmem:[#allocation10 + $0x9c] ss:$24 sps:$4 sm:$0xff]  }
 0x150   :  { %v1046_v7 = vsel %vm997_vm8, %v976_v13, %v1045_v41  ;;  %1561 = vmatprep.subr.bf16.mxu1 %v4004_v54  ;;  %v4014_v13 = vld [vmem:[#allocation10 + $0x1f0] ss:$24 sps:$4 sm:$0xff]   ;;  %v4020_v56 = vld [vmem:[#allocation10 + $0x220] ss:$24 sps:$4 sm:$0xff]   ;;  %v4028_v53 = vld [vmem:[#allocation10 + $0x254] ss:$24 sps:$4 sm:$0xff]  }
 0x151   :  { %v1049_v46 = vpack.c.bf16 %v1046_v7, %v1030_v25  ;;  %v4023_v51 = vld [vmem:[#allocation10 + $0x98] ss:$24 sps:$4 sm:$0xff]   ;;  %v4031_v25 = vld [vmem:[#allocation10 + $0xcc] ss:$24 sps:$4 sm:$0xff]   ;;  %v4029_v7 = vld [vmem:[#allocation10 + $0xc8] ss:$24 sps:$4 sm:$0xff]  }
 0x152   :  { %v4026_v41 = vld [vmem:[#allocation10 + $0x250] ss:$24 sps:$4 sm:$0xff]   ;;  %v4044_v38 = vld [vmem:[#allocation10 + $0x2e0] ss:$24 sps:$4 sm:$0xff]   ;;  %v4055_v63 = vld [vmem:[#allocation10 + $0x30c] ss:$24 sps:$4 sm:$0xff]  }
 0x153   :  { %3899 = vmatmul.mubr.msk.bf16.vlgmr.msra.gmra.mrb[0].mxu0 %vm1051_vm9, %v1049_v46  ;;  %v4037_v46 = vld [vmem:[#allocation10 + $0xfc] ss:$24 sps:$4 sm:$0xff]   ;;  %v4050_v11 = vld [vmem:[#allocation10] ss:$24 sps:$4 sm:$0xff]   ;;  %v4067_v33 = vld [vmem:[#allocation10 + $0x36c] ss:$24 sps:$4 sm:$0xff]  }
 0x154   :  { %1521 = vmatpush1.bf16.msra.mxu0 %v3956_v22  ;;  %1552 = vmatprep.mubr.bf16.mxu0 %v4543_v10  ;;  %v4034_v22 = vld [vmem:[#allocation10 + $0x284] ss:$24 sps:$4 sm:$0xff]   ;;  %v4062_v54 = vld [vmem:[#allocation10 + $0x60] ss:$24 sps:$4 sm:$0xff]  }
 0x155   :  { %1522 = vmatprep.subr.bf16.mxu0 %v3964_v32  ;;  %v4032_v32 = vld [vmem:[#allocation10 + $0x280] ss:$24 sps:$4 sm:$0xff]   ;;  %v4061_v0 = vld [vmem:[#allocation10 + $0x33c] ss:$24 sps:$4 sm:$0xff]  }
 0x158   :  { %1523 = vmatpush1.bf16.msra.mxu0 %v3962_v18  ;;  %v4035_v18 = vld [vmem:[#allocation10 + $0xf8] ss:$24 sps:$4 sm:$0xff]  }
 0x159   :  { %1524 = vmatprep.subr.bf16.mxu0 %v3970_v61  ;;  %v4040_v61 = vld [vmem:[#allocation10 + $0x2b4] ss:$24 sps:$4 sm:$0xff]  }
 0x15c   :  { %1525 = vmatpush1.bf16.msra.mxu0 %v3968_v23  ;;  %v4043_v23 = vld [vmem:[#allocation10 + $0x12c] ss:$24 sps:$4 sm:$0xff]  }
 0x15d   :  { %1526 = vmatprep.subr.bf16.mxu0 %v3976_v60  ;;  %v4038_v60 = vld [vmem:[#allocation10 + $0x2b0] ss:$24 sps:$4 sm:$0xff]  }
 0x160   :  { %1527 = vmatpush1.bf16.msra.mxu0 %v3974_v17  ;;  %v4041_v17 = vld [vmem:[#allocation10 + $0x128] ss:$24 sps:$4 sm:$0xff]  }
 0x161   :  { %1528 = vmatprep.subr.bf16.mxu0 %v3982_v21  ;;  %v4046_v21 = vld [vmem:[#allocation10 + $0x2e4] ss:$24 sps:$4 sm:$0xff]  }
 0x164   :  { %1529 = vmatpush1.bf16.msra.mxu0 %v3980_v48  ;;  %v4049_v48 = vld [vmem:[#allocation10 + $0x15c] ss:$24 sps:$4 sm:$0xff]  }
 0x165   :  { %1530 = vmatprep.subr.bf16.mxu0 %v3988_v29  ;;  %v4047_v29 = vld [vmem:[#allocation10 + $0x158] ss:$24 sps:$4 sm:$0xff]  }
 0x168   :  { %1531 = vmatpush1.bf16.msra.mxu0 %v3986_v31  ;;  %v4052_v31 = vld [vmem:[#allocation10 + $0x4] ss:$24 sps:$4 sm:$0xff]  }
 0x169   :  { %1532 = vmatprep.subr.bf16.mxu0 %v3994_v34  ;;  %v4053_v34 = vld [vmem:[#allocation10 + $0x308] ss:$24 sps:$4 sm:$0xff]  }
 0x16c   :  { %1533 = vmatpush1.bf16.msra.mxu0 %v3992_v30  ;;  %v4058_v30 = vld [vmem:[#allocation10 + $0x34] ss:$24 sps:$4 sm:$0xff]  }
 0x16d   :  { %1534 = vmatprep.subr.bf16.mxu0 %v4000_v8  ;;  %v4059_v8 = vld [vmem:[#allocation10 + $0x338] ss:$24 sps:$4 sm:$0xff]  }
 0x170   :  { %1535 = vmatpush1.bf16.msra.mxu0 %v3998_v12  ;;  %v4064_v12 = vld [vmem:[#allocation10 + $0x64] ss:$24 sps:$4 sm:$0xff]  }
 0x171   :  { %1883 = vmatprep.subr.bf16.mxu0 %v4007_v49  ;;  %v4065_v49 = vld [vmem:[#allocation10 + $0x368] ss:$24 sps:$4 sm:$0xff]  }
 0x226   :  { %v3900_v62 = vpop.f32.mrb[0].mxu0 }
 0x227   :  { %v1120_v50 = vmul.f32 %v3900_v62, %v3425_v28  ;;  %v1096_v5 = vpop.f32.mrb[1].mxu0  ;;  %v4073_v62 = vld [vmem:[#allocation10 + $0x39c] ss:$24 sps:$4 sm:$0xff]  }
 0x228   :  { %v1118_v58 = vmul.f32 %v3425_v28, %v1096_v5  ;;  %v3901_v37 = vpop.f32.mrb[2].mxu0  ;;  %v4076_v5 = vld [vmem:[#allocation10 + $0xc4] ss:$24 sps:$4 sm:$0xff]  }
 0x229   :  { %v1131_v35 = vadd.f32 %v3426_v14, %v1120_v50  ;;  %v1121_v27 = vmul.f32 %v3901_v37, %v3425_v28  ;;  %v1099_v40 = vpop.f32.mrb[3].mxu0  ;;  %v4071_v50 = vld [vmem:[#allocation10 + $0x398] ss:$24 sps:$4 sm:$0xff]  }
 0x22a   :  { %v1129_v15 = vadd.f32 %v3426_v14, %v1118_v58  ;;  %v1119_v55 = vmul.f32 %v3425_v28, %v1099_v40  ;;  %v4070_v28 = vld [vmem:[#allocation10 + $0x94] ss:$24 sps:$4 sm:$0xff]   ;;  %v4074_v37 = vld [vmem:[#allocation10 + $0xc0] ss:$24 sps:$4 sm:$0xff]  }
 0x22b   :  { %v1132_v16 = vadd.f32 %v3426_v14, %v1121_v27  ;;  %v1135_v36 = vmax.f32 %v1131_v35, 0.0  ;;  %v4079_v58 = vld [vmem:[#allocation10 + $0x3cc] ss:$24 sps:$4 sm:$0xff]   ;;  %v4077_v35 = vld [vmem:[#allocation10 + $0x3c8] ss:$24 sps:$4 sm:$0xff]  }
 0x22c   :  { %v1130_v44 = vadd.f32 %v3426_v14, %v1119_v55  ;;  %v1133_v57 = vmax.f32 %v1129_v15, 0.0  ;;  %v4068_v14 = vld [vmem:[#allocation10 + $0x90] ss:$24 sps:$4 sm:$0xff]   ;;  %v4082_v27 = vld [vmem:[#allocation10 + $0xf4] ss:$24 sps:$4 sm:$0xff]  }
 0x22d   :  { %v1136_v6 = vmax.f32 %v1132_v16, 0.0  ;;  %v4085_v40 = vld [vmem:[#allocation10 + $0x3fc] ss:$24 sps:$4 sm:$0xff]   ;;  %v4080_v15 = vld [vmem:[#allocation10 + $0xf0] ss:$24 sps:$4 sm:$0xff]  }
 0x22e   :  { %v1134_v42 = vmax.f32 %v1130_v44, 0.0  ;;  %v4083_v55 = vld [vmem:[#allocation10 + $0x3f8] ss:$24 sps:$4 sm:$0xff]   ;;  %v4088_v16 = vld [vmem:[#allocation10 + $0x124] ss:$24 sps:$4 sm:$0xff]  }
 0x22f   :  { %v5597_v1 = vpack.c.bf16 %v1136_v6, %v1135_v36  ;;  %v4091_v44 = vld [vmem:[#allocation10 + $0x42c] ss:$24 sps:$4 sm:$0xff]   ;;  %v4086_v36 = vld [vmem:[#allocation10 + $0x120] ss:$24 sps:$4 sm:$0xff]  }
 0x230   :  { %v5599_v24 = vpack.c.bf16 %v1134_v42, %v1133_v57  ;;  %v4089_v6 = vld [vmem:[#allocation10 + $0x428] ss:$24 sps:$4 sm:$0xff]   ;;  %v4094_v57 = vld [vmem:[#allocation10 + $0x154] ss:$24 sps:$4 sm:$0xff]  }
 0x231   :  { %v4097_v42 = vld [vmem:[#allocation10 + $0x45c] ss:$24 sps:$4 sm:$0xff]  }
 0x232   :  { %v5602_v59 = vrot.slane %v5599_v24, 4 }
 0x234   :  { %1512 = vmatmul.mubr.bf16.vlgmr.msra.gmra.mrb[0].mxu1 %v5602_v59  ;;  %1553 = vmatmul.mubr.bf16.vlgmr.msra.gmra.mrb[4].mxu0 %v5602_v59 }
 0x235   :  { %1562 = vmatpush1.bf16.msra.mxu1 %v4002_v39  ;;  %1884 = vmatpush1.bf16.msra.mxu0 %v4005_v26  ;;  %v4092_v39 = vld [vmem:[#allocation10 + $0x150] ss:$24 sps:$4 sm:$0xff]  }
 0x236   :  { %1563 = vmatprep.subr.bf16.mxu1 %v4010_v47  ;;  %1885 = vmatprep.subr.bf16.mxu0 %v4013_v3  ;;  %v4095_v26 = vld [vmem:[#allocation10 + $0x458] ss:$24 sps:$4 sm:$0xff]   ;;  %v4103_v47 = vld [vmem:[#allocation10 + $0x48c] ss:$24 sps:$4 sm:$0xff]  }
 0x237   :  { %1593 = vmatprep.mubr.bf16.mxu1 %v4543_v10  ;;  %1915 = vmatprep.mubr.bf16.mxu0 %v4543_v10  ;;  %v4098_v3 = vld [vmem:[#allocation10 + $0x10] ss:$24 sps:$4 sm:$0xff]  }
 0x239   :  { %1564 = vmatpush1.bf16.msra.mxu1 %v4008_v52  ;;  %1886 = vmatpush1.bf16.msra.mxu0 %v4011_v4  ;;  %v4101_v52 = vld [vmem:[#allocation10 + $0x488] ss:$24 sps:$4 sm:$0xff]   ;;  %v4106_v4 = vld [vmem:[#allocation10 + $0x44] ss:$24 sps:$4 sm:$0xff]  }
 0x23a   :  { %1565 = vmatprep.subr.bf16.mxu1 %v4016_v19  ;;  %1887 = vmatprep.subr.bf16.mxu0 %v4019_v20  ;;  %v4109_v19 = vld [vmem:[#allocation10 + $0x4bc] ss:$24 sps:$4 sm:$0xff]   ;;  %v4104_v20 = vld [vmem:[#allocation10 + $0x40] ss:$24 sps:$4 sm:$0xff]  }
 0x23d   :  { %1566 = vmatpush1.bf16.msra.mxu1 %v4014_v13  ;;  %1888 = vmatpush1.bf16.msra.mxu0 %v4017_v2  ;;  %v4107_v13 = vld [vmem:[#allocation10 + $0x4b8] ss:$24 sps:$4 sm:$0xff]   ;;  %v4112_v2 = vld [vmem:[#allocation10 + $0x74] ss:$24 sps:$4 sm:$0xff]  }
 0x23e   :  { %1567 = vmatprep.subr.bf16.mxu1 %v4022_v45  ;;  %1889 = vmatprep.subr.bf16.mxu0 %v4025_v43  ;;  %v4115_v45 = vld [vmem:[#allocation10 + $0x4ec] ss:$24 sps:$4 sm:$0xff]   ;;  %v4110_v43 = vld [vmem:[#allocation10 + $0x70] ss:$24 sps:$4 sm:$0xff]  }
 0x241   :  { %1568 = vmatpush1.bf16.msra.mxu1 %v4020_v56  ;;  %1890 = vmatpush1.bf16.msra.mxu0 %v4023_v51  ;;  %v4113_v56 = vld [vmem:[#allocation10 + $0x4e8] ss:$24 sps:$4 sm:$0xff]   ;;  %v4118_v51 = vld [vmem:[#allocation10 + $0xa4] ss:$24 sps:$4 sm:$0xff]  }
 0x242   :  { %1569 = vmatprep.subr.bf16.mxu1 %v4028_v53  ;;  %1891 = vmatprep.subr.bf16.mxu0 %v4031_v25  ;;  %v4121_v53 = vld [vmem:[#allocation10 + $0x51c] ss:$24 sps:$4 sm:$0xff]   ;;  %v4116_v25 = vld [vmem:[#allocation10 + $0xa0] ss:$24 sps:$4 sm:$0xff]  }
 0x245   :  { %1570 = vmatpush1.bf16.msra.mxu1 %v4026_v41  ;;  %1892 = vmatpush1.bf16.msra.mxu0 %v4029_v7  ;;  %v4119_v41 = vld [vmem:[#allocation10 + $0x518] ss:$24 sps:$4 sm:$0xff]   ;;  %v4124_v7 = vld [vmem:[#allocation10 + $0xd4] ss:$24 sps:$4 sm:$0xff]  }
 0x246   :  { %1571 = vmatprep.subr.bf16.mxu1 %v4034_v22  ;;  %1893 = vmatprep.subr.bf16.mxu0 %v4037_v46  ;;  %v4127_v22 = vld [vmem:[#allocation10 + $0x54c] ss:$24 sps:$4 sm:$0xff]   ;;  %v4122_v46 = vld [vmem:[#allocation10 + $0xd0] ss:$24 sps:$4 sm:$0xff]  }
 0x249   :  { %1572 = vmatpush1.bf16.msra.mxu1 %v4032_v32  ;;  %1894 = vmatpush1.bf16.msra.mxu0 %v4035_v18  ;;  %v4125_v32 = vld [vmem:[#allocation10 + $0x548] ss:$24 sps:$4 sm:$0xff]   ;;  %v4130_v18 = vld [vmem:[#allocation10 + $0x104] ss:$24 sps:$4 sm:$0xff]  }
 0x24a   :  { %1573 = vmatprep.subr.bf16.mxu1 %v4040_v61  ;;  %1895 = vmatprep.subr.bf16.mxu0 %v4043_v23  ;;  %v4133_v61 = vld [vmem:[#allocation10 + $0x57c] ss:$24 sps:$4 sm:$0xff]   ;;  %v4128_v23 = vld [vmem:[#allocation10 + $0x100] ss:$24 sps:$4 sm:$0xff]  }
 0x24d   :  { %1574 = vmatpush1.bf16.msra.mxu1 %v4038_v60  ;;  %1896 = vmatpush1.bf16.msra.mxu0 %v4041_v17  ;;  %v4131_v60 = vld [vmem:[#allocation10 + $0x578] ss:$24 sps:$4 sm:$0xff]   ;;  %v4136_v17 = vld [vmem:[#allocation10 + $0x134] ss:$24 sps:$4 sm:$0xff]  }
 0x24e   :  { %1575 = vmatprep.subr.bf16.mxu1 %v4046_v21  ;;  %1897 = vmatprep.subr.bf16.mxu0 %v4049_v48  ;;  %v4139_v21 = vld [vmem:[#allocation10 + $0x5ac] ss:$24 sps:$4 sm:$0xff]   ;;  %v4134_v48 = vld [vmem:[#allocation10 + $0x130] ss:$24 sps:$4 sm:$0xff]  }
 0x251   :  { %1576 = vmatpush1.bf16.msra.mxu1 %v4044_v38  ;;  %1898 = vmatpush1.bf16.msra.mxu0 %v4047_v29  ;;  %v4137_v38 = vld [vmem:[#allocation10 + $0x5a8] ss:$24 sps:$4 sm:$0xff]   ;;  %v4142_v29 = vld [vmem:[#allocation10 + $0x164] ss:$24 sps:$4 sm:$0xff]  }
 0x252   :  { %1842 = vmatprep.subr.bf16.mxu1 %v4052_v31  ;;  %2295 = vmatprep.subr.bf16.mxu0 %v4055_v63  ;;  %v4145_v31 = vld [vmem:[#allocation10 + $0x5dc] ss:$24 sps:$4 sm:$0xff]   ;;  %v4140_v63 = vld [vmem:[#allocation10 + $0x160] ss:$24 sps:$4 sm:$0xff]  }
 0x254   :  { %1594 = vmatmul.mubr.bf16.vlgmr.msra.gmra.mrb[4].mxu1 %v5602_v59  ;;  %1916 = vmatmul.mubr.bf16.vlgmr.msra.gmra.mrb[4].mxu0 %v5599_v24  ;;  %v4100_v59 = vld [vmem:[#allocation10 + $0x14] ss:$24 sps:$4 sm:$0xff]  }
 0x255   :  { %1843 = vmatpush1.bf16.msra.mxu1 %v4050_v11  ;;  %2296 = vmatpush1.bf16.msra.mxu0 %v4053_v34  ;;  %v4143_v11 = vld [vmem:[#allocation10 + $0x5d8] ss:$24 sps:$4 sm:$0xff]   ;;  %v4148_v34 = vld [vmem:[#allocation10 + $0x304] ss:$24 sps:$4 sm:$0xff]  }
 0x256   :  { %1844 = vmatprep.subr.bf16.mxu1 %v4058_v30  ;;  %2297 = vmatprep.subr.bf16.mxu0 %v4061_v0  ;;  %v4146_v30 = vld [vmem:[#allocation10 + $0x300] ss:$24 sps:$4 sm:$0xff]   ;;  %v5617_v0 = vrot.slane %v5597_v1, 4 }
 0x257   :  { %1874 = vmatprep.mubr.bf16.mxu1 %v4543_v10  ;;  %2327 = vmatprep.mubr.bf16.mxu0 %v4543_v10 }
 0x259   :  { %1845 = vmatpush1.bf16.msra.mxu1 %v4056_v9  ;;  %2298 = vmatpush1.bf16.msra.mxu0 %v4059_v8  ;;  %v4151_v9 = vld [vmem:[#allocation10 + $0x334] ss:$24 sps:$4 sm:$0xff]   ;;  %v4149_v8 = vld [vmem:[#allocation10 + $0x330] ss:$24 sps:$4 sm:$0xff]  }
 0x25a   :  { %1846 = vmatprep.subr.bf16.mxu1 %v4064_v12  ;;  %2299 = vmatprep.subr.bf16.mxu0 %v4067_v33  ;;  %v4154_v12 = vld [vmem:[#allocation10 + $0x364] ss:$24 sps:$4 sm:$0xff]   ;;  %v4152_v33 = vld [vmem:[#allocation10 + $0x360] ss:$24 sps:$4 sm:$0xff]  }
 0x25d   :  { %1847 = vmatpush1.bf16.msra.mxu1 %v4062_v54  ;;  %2300 = vmatpush1.bf16.msra.mxu0 %v4065_v49  ;;  %v4157_v54 = vld [vmem:[#allocation10 + $0x394] ss:$24 sps:$4 sm:$0xff]   ;;  %v4155_v49 = vld [vmem:[#allocation10 + $0x390] ss:$24 sps:$4 sm:$0xff]  }
 0x25e   :  { %1848 = vmatprep.subr.bf16.mxu1 %v4070_v28  ;;  %2301 = vmatprep.subr.bf16.mxu0 %v4073_v62  ;;  %v4160_v28 = vld [vmem:[#allocation10 + $0x3c4] ss:$24 sps:$4 sm:$0xff]   ;;  %v4158_v62 = vld [vmem:[#allocation10 + $0x3c0] ss:$24 sps:$4 sm:$0xff]  }
 0x261   :  { %1849 = vmatpush1.bf16.msra.mxu1 %v4068_v14  ;;  %2302 = vmatpush1.bf16.msra.mxu0 %v4071_v50  ;;  %v4161_v14 = vld [vmem:[#allocation10 + $0x3f0] ss:$24 sps:$4 sm:$0xff]   ;;  %v4166_v50 = vld [vmem:[#allocation10 + $0x424] ss:$24 sps:$4 sm:$0xff]  }
 0x262   :  { %1850 = vmatprep.subr.bf16.mxu1 %v4076_v5  ;;  %2303 = vmatprep.subr.bf16.mxu0 %v4079_v58  ;;  %v4164_v5 = vld [vmem:[#allocation10 + $0x420] ss:$24 sps:$4 sm:$0xff]   ;;  %v4169_v58 = vld [vmem:[#allocation10 + $0x454] ss:$24 sps:$4 sm:$0xff]  }
 0x265   :  { %1851 = vmatpush1.bf16.msra.mxu1 %v4074_v37  ;;  %2304 = vmatpush1.bf16.msra.mxu0 %v4077_v35  ;;  %v4167_v37 = vld [vmem:[#allocation10 + $0x450] ss:$24 sps:$4 sm:$0xff]   ;;  %v4172_v35 = vld [vmem:[#allocation10 + $0x314] ss:$24 sps:$4 sm:$0xff]  }
 0x266   :  { %1852 = vmatprep.subr.bf16.mxu1 %v4082_v27  ;;  %2305 = vmatprep.subr.bf16.mxu0 %v4085_v40  ;;  %v4170_v27 = vld [vmem:[#allocation10 + $0x310] ss:$24 sps:$4 sm:$0xff]   ;;  %v4175_v40 = vld [vmem:[#allocation10 + $0x344] ss:$24 sps:$4 sm:$0xff]  }
 0x269   :  { %1853 = vmatpush1.bf16.msra.mxu1 %v4080_v15  ;;  %2306 = vmatpush1.bf16.msra.mxu0 %v4083_v55  ;;  %v4173_v15 = vld [vmem:[#allocation10 + $0x340] ss:$24 sps:$4 sm:$0xff]   ;;  %v4178_v55 = vld [vmem:[#allocation10 + $0x374] ss:$24 sps:$4 sm:$0xff]  }
 0x26a   :  { %1854 = vmatprep.subr.bf16.mxu1 %v4088_v16  ;;  %2307 = vmatprep.subr.bf16.mxu0 %v4091_v44  ;;  %v4176_v16 = vld [vmem:[#allocation10 + $0x370] ss:$24 sps:$4 sm:$0xff]   ;;  %v4181_v44 = vld [vmem:[#allocation10 + $0x3a4] ss:$24 sps:$4 sm:$0xff]  }
 0x26d   :  { %1855 = vmatpush1.bf16.msra.mxu1 %v4086_v36  ;;  %2308 = vmatpush1.bf16.msra.mxu0 %v4089_v6  ;;  %v4179_v36 = vld [vmem:[#allocation10 + $0x3a0] ss:$24 sps:$4 sm:$0xff]   ;;  %v4184_v6 = vld [vmem:[#allocation10 + $0x3d4] ss:$24 sps:$4 sm:$0xff]  }
 0x26e   :  { %1856 = vmatprep.subr.bf16.mxu1 %v4094_v57  ;;  %2309 = vmatprep.subr.bf16.mxu0 %v4097_v42  ;;  %v4182_v57 = vld [vmem:[#allocation10 + $0x3d0] ss:$24 sps:$4 sm:$0xff]   ;;  %v4187_v42 = vld [vmem:[#allocation10 + $0x404] ss:$24 sps:$4 sm:$0xff]  }
 0x271   :  { %1857 = vmatpush1.bf16.msra.mxu1 %v4092_v39  ;;  %2310 = vmatpush1.bf16.msra.mxu0 %v4095_v26  ;;  %v4185_v39 = vld [vmem:[#allocation10 + $0x400] ss:$24 sps:$4 sm:$0xff]   ;;  %v4190_v26 = vld [vmem:[#allocation10 + $0x434] ss:$24 sps:$4 sm:$0xff]  }
 0x272   :  { %1924 = vmatprep.subr.bf16.mxu1 %v4100_v59  ;;  %2716 = vmatprep.subr.bf16.mxu0 %v4103_v47  ;;  %v4188_v59 = vld [vmem:[#allocation10 + $0x430] ss:$24 sps:$4 sm:$0xff]   ;;  %v4193_v47 = vld [vmem:[#allocation10 + $0x464] ss:$24 sps:$4 sm:$0xff]  }
 0x274   :  { %1875 = vmatmul.mubr.bf16.vlgmr.msra.gmra.mrb[0].mxu1 %v5599_v24  ;;  %2328 = vmatmul.mubr.bf16.vlgmr.msra.gmra.mrb[4].mxu0 %v5597_v1 }
 0x275   :  { %1925 = vmatpush1.bf16.msra.mxu1 %v4098_v3  ;;  %2717 = vmatpush1.bf16.msra.mxu0 %v4101_v52  ;;  %v4191_v3 = vld [vmem:[#allocation10 + $0x460] ss:$24 sps:$4 sm:$0xff]   ;;  %v4196_v52 = vld [vmem:[#allocation10 + $0x484] ss:$24 sps:$4 sm:$0xff]  }
 0x276   :  { %1926 = vmatprep.subr.bf16.mxu1 %v4106_v4  ;;  %2718 = vmatprep.subr.bf16.mxu0 %v4109_v19  ;;  %v4194_v4 = vld [vmem:[#allocation10 + $0x480] ss:$24 sps:$4 sm:$0xff]   ;;  %v4199_v19 = vld [vmem:[#allocation10 + $0x4b4] ss:$24 sps:$4 sm:$0xff]  }
 0x277   :  { %1956 = vmatprep.mubr.bf16.mxu1 %v4543_v10  ;;  %2748 = vmatprep.mubr.bf16.mxu0 %v4543_v10 }
 0x279   :  { %1927 = vmatpush1.bf16.msra.mxu1 %v4104_v20  ;;  %2719 = vmatpush1.bf16.msra.mxu0 %v4107_v13  ;;  %v4197_v20 = vld [vmem:[#allocation10 + $0x4b0] ss:$24 sps:$4 sm:$0xff]   ;;  %v4202_v13 = vld [vmem:[#allocation10 + $0x4e4] ss:$24 sps:$4 sm:$0xff]  }
 0x27a   :  { %1928 = vmatprep.subr.bf16.mxu1 %v4112_v2  ;;  %2720 = vmatprep.subr.bf16.mxu0 %v4115_v45  ;;  %v4200_v2 = vld [vmem:[#allocation10 + $0x4e0] ss:$24 sps:$4 sm:$0xff]   ;;  %v4205_v45 = vld [vmem:[#allocation10 + $0x514] ss:$24 sps:$4 sm:$0xff]  }
 0x27d   :  { %1929 = vmatpush1.bf16.msra.mxu1 %v4110_v43  ;;  %2721 = vmatpush1.bf16.msra.mxu0 %v4113_v56  ;;  %v4203_v43 = vld [vmem:[#allocation10 + $0x510] ss:$24 sps:$4 sm:$0xff]   ;;  %v4208_v56 = vld [vmem:[#allocation10 + $0x544] ss:$24 sps:$4 sm:$0xff]  }
 0x27e   :  { %1930 = vmatprep.subr.bf16.mxu1 %v4118_v51  ;;  %2722 = vmatprep.subr.bf16.mxu0 %v4121_v53  ;;  %v4206_v51 = vld [vmem:[#allocation10 + $0x540] ss:$24 sps:$4 sm:$0xff]   ;;  %v4211_v53 = vld [vmem:[#allocation10 + $0x574] ss:$24 sps:$4 sm:$0xff]  }
 0x281   :  { %1931 = vmatpush1.bf16.msra.mxu1 %v4116_v25  ;;  %2723 = vmatpush1.bf16.msra.mxu0 %v4119_v41  ;;  %v4214_v25 = vld [vmem:[#allocation10 + $0x5a4] ss:$24 sps:$4 sm:$0xff]   ;;  %v4212_v41 = vld [vmem:[#allocation10 + $0x5a0] ss:$24 sps:$4 sm:$0xff]  }
 0x282   :  { %1932 = vmatprep.subr.bf16.mxu1 %v4124_v7  ;;  %2724 = vmatprep.subr.bf16.mxu0 %v4127_v22  ;;  %v4217_v7 = vld [vmem:[#allocation10 + $0x5d4] ss:$24 sps:$4 sm:$0xff]   ;;  %v4215_v22 = vld [vmem:[#allocation10 + $0x5d0] ss:$24 sps:$4 sm:$0xff]  }
 0x285   :  { %1933 = vmatpush1.bf16.msra.mxu1 %v4122_v46  ;;  %2725 = vmatpush1.bf16.msra.mxu0 %v4125_v32  ;;  %v4220_v46 = vld [vmem:[#allocation10 + $0x494] ss:$24 sps:$4 sm:$0xff]  }
 0x286   :  { %1934 = vmatprep.subr.bf16.mxu1 %v4130_v18  ;;  %2726 = vmatprep.subr.bf16.mxu0 %v4133_v61  ;;  %v4242_v32 = vld [vmem:[#allocation14 + $0x40] sm:$0xff]   ;;  %v4244_v61 = vld [vmem:[#allocation14 + $0x48] sm:$0xff]  }
 0x287   :  { %v4243_v18 = vld [vmem:[#allocation14] sm:$0xff]  }
 0x289   :  { %1935 = vmatpush1.bf16.msra.mxu1 %v4128_v23  ;;  %2727 = vmatpush1.bf16.msra.mxu0 %v4131_v60  ;;  %v4218_v23 = vld [vmem:[#allocation10 + $0x490] ss:$24 sps:$4 sm:$0xff]   ;;  %v4223_v60 = vld [vmem:[#allocation10 + $0x4c4] ss:$24 sps:$4 sm:$0xff]  }
 0x28a   :  { %1936 = vmatprep.subr.bf16.mxu1 %v4136_v17  ;;  %2728 = vmatprep.subr.bf16.mxu0 %v4139_v21  ;;  %v4245_v17 = vld [vmem:[#allocation14 + $0x8] sm:$0xff]   ;;  %v4246_v21 = vld [vmem:[#allocation14 + $0x50] sm:$0xff]  }
 0x28d   :  { %1937 = vmatpush1.bf16.msra.mxu1 %v4134_v48  ;;  %2729 = vmatpush1.bf16.msra.mxu0 %v4137_v38  ;;  %v4221_v48 = vld [vmem:[#allocation10 + $0x4c0] ss:$24 sps:$4 sm:$0xff]   ;;  %v4226_v38 = vld [vmem:[#allocation10 + $0x4f4] ss:$24 sps:$4 sm:$0xff]  }
 0x28e   :  { %1938 = vmatprep.subr.bf16.mxu1 %v4142_v29  ;;  %2730 = vmatprep.subr.bf16.mxu0 %v4145_v31  ;;  %v4247_v29 = vld [vmem:[#allocation14 + $0x10] sm:$0xff]   ;;  %v4248_v31 = vld [vmem:[#allocation14 + $0x58] sm:$0xff]  }
 0x291   :  { %1939 = vmatpush1.bf16.msra.mxu1 %v4140_v63  ;;  %2731 = vmatpush1.bf16.msra.mxu0 %v4143_v11  ;;  %v4224_v63 = vld [vmem:[#allocation10 + $0x4f0] ss:$24 sps:$4 sm:$0xff]   ;;  %v4229_v11 = vld [vmem:[#allocation10 + $0x524] ss:$24 sps:$4 sm:$0xff]  }
 0x292   :  { %2254 = vmatprep.subr.bf16.mxu1 %v4148_v34  ;;  %3830 = vmatprep.subr.bf16.mxu0 %v4242_v32  ;;  %v4249_v34 = vld [vmem:[#allocation14 + $0x18] sm:$0xff]  }
 0x294   :  { %1957 = vmatmul.mubr.bf16.vlgmr.msra.gmra.mrb[4].mxu1 %v5599_v24  ;;  %2749 = vmatmul.mubr.bf16.vlgmr.msra.gmra.mrb[4].mxu0 %v5617_v0  ;;  %v4163_v24 = vld [vmem:[#allocation10 + $0x3f4] ss:$24 sps:$4 sm:$0xff]  }
 0x295   :  { %2255 = vmatpush1.bf16.msra.mxu1 %v4146_v30  ;;  %2286 = vmatprep.mubr.bf16.mxu1 %v4543_v10  ;;  %v4250_v30 = vld [vmem:[#allocation14 + $0x60] sm:$0xff]  }
 0x296   :  { %2256 = vmatprep.subr.bf16.mxu1 %v4151_v9  ;;  %3831 = vmatpush3.bf16.msra.mxu0 %v4243_v18  ;;  %v4227_v9 = vld [vmem:[#allocation10 + $0x520] ss:$24 sps:$4 sm:$0xff]  }
 0x297   :  { %3832 = vmatprep.subr.bf16.mxu0 %v4244_v61  ;;  %v4260_v18 = vld [vmem:[#allocation14 + $0xc8] sm:$0xff]  }
 0x299   :  { %2257 = vmatpush1.bf16.msra.mxu1 %v4149_v8  ;;  %v4232_v8 = vld [vmem:[#allocation10 + $0x554] ss:$24 sps:$4 sm:$0xff]  }
 0x29a   :  { %2258 = vmatprep.subr.bf16.mxu1 %v4154_v12  ;;  %3833 = vmatpush3.bf16.msra.mxu0 %v4245_v17  ;;  %v4252_v12 = vld [vmem:[#allocation14 + $0x68] sm:$0xff]   ;;  %v4263_v17 = vld [vmem:[#allocation14 + $0x90] sm:$0xff]  }
 0x29b   :  { %3834 = vmatprep.subr.bf16.mxu0 %v4246_v21  ;;  %v4264_v21 = vld [vmem:[#allocation14 + $0xd8] sm:$0xff]  }
 0x29d   :  { %2259 = vmatpush1.bf16.msra.mxu1 %v4152_v33  ;;  %v4230_v33 = vld [vmem:[#allocation10 + $0x550] ss:$24 sps:$4 sm:$0xff]  }
 0x29e   :  { %2260 = vmatprep.subr.bf16.mxu1 %v4157_v54  ;;  %3835 = vmatpush3.bf16.msra.mxu0 %v4247_v29  ;;  %v4235_v54 = vld [vmem:[#allocation10 + $0x584] ss:$24 sps:$4 sm:$0xff]   ;;  %v4266_v29 = vld [vmem:[#allocation14 + $0xe0] sm:$0xff]  }
 0x29f   :  { %3836 = vmatprep.subr.bf16.mxu0 %v4248_v31  ;;  %v4267_v31 = vld [vmem:[#allocation14 + $0xa0] sm:$0xff]  }
 0x2a1   :  { %2261 = vmatpush1.bf16.msra.mxu1 %v4155_v49  ;;  %v4253_v49 = vld [vmem:[#allocation14 + $0x28] sm:$0xff]  }
 0x2a2   :  { %2262 = vmatprep.subr.bf16.mxu1 %v4160_v28  ;;  %3837 = vmatpush3.bf16.msra.mxu0 %v4249_v34  ;;  %v4233_v28 = vld [vmem:[#allocation10 + $0x580] ss:$24 sps:$4 sm:$0xff]  }
 0x2a3   :  { %3838 = vmatprep.subr.bf16.mxu0 %v4250_v30  ;;  %v4269_v30 = vld [vmem:[#allocation14 + $0xa8] sm:$0xff]  }
 0x2a5   :  { %2263 = vmatpush1.bf16.msra.mxu1 %v4158_v62  ;;  %v4238_v62 = vld [vmem:[#allocation10 + $0x5b4] ss:$24 sps:$4 sm:$0xff]  }
 0x2a6   :  { %2264 = vmatprep.subr.bf16.mxu1 %v4163_v24  ;;  %v4236_v24 = vld [vmem:[#allocation10 + $0x5b0] ss:$24 sps:$4 sm:$0xff]  }
 0x2a9   :  { %2265 = vmatpush1.bf16.msra.mxu1 %v4161_v14  ;;  %v4241_v14 = vld [vmem:[#allocation10 + $0x5e4] ss:$24 sps:$4 sm:$0xff]  }
 0x2aa   :  { %2266 = vmatprep.subr.bf16.mxu1 %v4166_v50  ;;  %v4239_v50 = vld [vmem:[#allocation10 + $0x5e0] ss:$24 sps:$4 sm:$0xff]  }
 0x2ad   :  { %2267 = vmatpush1.bf16.msra.mxu1 %v4164_v5  ;;  %v4254_v5 = vld [vmem:[#allocation14 + $0x70] sm:$0xff]  }
 0x2ae   :  { %2268 = vmatprep.subr.bf16.mxu1 %v4169_v58  ;;  %v4255_v58 = vld [vmem:[#allocation14 + $0x30] sm:$0xff]  }
 0x2b1   :  { %2269 = vmatpush1.bf16.msra.mxu1 %v4167_v37  ;;  %v4256_v37 = vld [vmem:[#allocation14 + $0x78] sm:$0xff]  }
 0x2b2   :  { %2336 = vmatprep.subr.bf16.mxu1 %v4172_v35  ;;  %v4257_v35 = vld [vmem:[#allocation14 + $0x38] sm:$0xff]  }
 0x2b4   :  { %2287 = vmatmul.mubr.bf16.vlgmr.msra.gmra.mrb[0].mxu1 %v5597_v1 }
 0x2b5   :  { %2337 = vmatpush1.bf16.msra.mxu1 %v4170_v27  ;;  %2368 = vmatprep.mubr.bf16.mxu1 %v4543_v10  ;;  %v4258_v27 = vld [vmem:[#allocation14 + $0xc0] sm:$0xff]  }
 0x2b6   :  { %2338 = vmatprep.subr.bf16.mxu1 %v4175_v40 }
 0x2b9   :  { %2339 = vmatpush1.bf16.msra.mxu1 %v4173_v15 }
 0x2ba   :  { %2340 = vmatprep.subr.bf16.mxu1 %v4178_v55 }
 0x2bd   :  { %2341 = vmatpush1.bf16.msra.mxu1 %v4176_v16 }
 0x2be   :  { %2342 = vmatprep.subr.bf16.mxu1 %v4181_v44  ;;  %v2806_v44 = vlaneseq }
 0x2c1   :  { %2343 = vmatpush1.bf16.msra.mxu1 %v4179_v36  ;;  %v5629_v36 = vshrl.u32 %v2806_v44, 7  ;;  %v4276_v44 = vld [vmem:[#allocation14 + $0x148] sm:$0xff]  }
 0x2c2   :  { %2344 = vmatprep.subr.bf16.mxu1 %v4184_v6 }
 0x2c3   :  { %v2820_v6 = vsub.s32 3, %v5629_v36  ;;  %v2828_v34 = vsub.s32 5, %v5629_v36 }
 0x2c5   :  { %2345 = vmatpush1.bf16.msra.mxu1 %v4182_v57  ;;  %v2808_v57 = vsub.s32 0, %v5629_v36 }
 0x2c6   :  { %2346 = vmatprep.subr.bf16.mxu1 %v4187_v42 }
 0x2c9   :  { %2347 = vmatpush1.bf16.msra.mxu1 %v4185_v39  ;;  %v2812_v39 = vsub.s32 1, %v5629_v36 }
 0x2ca   :  { %2348 = vmatprep.subr.bf16.mxu1 %v4190_v26  ;;  %v5637_v26 = vld [vmem:[#allocation13] sm:$0x3f] }
 0x2cd   :  { %2349 = vmatpush1.bf16.msra.mxu1 %v4188_v59 }
 0x2ce   :  { %2350 = vmatprep.subr.bf16.mxu1 %v4193_v47 }
 0x2d1   :  { %2351 = vmatpush1.bf16.msra.mxu1 %v4191_v3  ;;  %v2859_v3 = vrot.slane %v5637_v26, %v2820_v6 }
 0x2d2   :  { %2675 = vmatprep.subr.bf16.mxu1 %v4196_v52 }
 0x2d4   :  { %2369 = vmatmul.mubr.bf16.vlgmr.msra.gmra.mrb[4].mxu1 %v5597_v1  ;;  %v4209_v1 = vld [vmem:[#allocation10 + $0x570] ss:$24 sps:$4 sm:$0xff]  }
 0x2d5   :  { %2676 = vmatpush1.bf16.msra.mxu1 %v4194_v4  ;;  %2707 = vmatprep.mubr.bf16.mxu1 %v4543_v10  ;;  %v2847_v4 = vrot.slane %v5637_v26, %v2808_v57 }
 0x2d6   :  { %2677 = vmatprep.subr.bf16.mxu1 %v4199_v19 }
 0x2d9   :  { %2678 = vmatpush1.bf16.msra.mxu1 %v4197_v20  ;;  %v2851_v20 = vrot.slane %v5637_v26, %v2812_v39 }
 0x2da   :  { %2679 = vmatprep.subr.bf16.mxu1 %v4202_v13 }
 0x2dd   :  { %2680 = vmatpush1.bf16.msra.mxu1 %v4200_v2 }
 0x2de   :  { %2681 = vmatprep.subr.bf16.mxu1 %v4205_v45 }
 0x2e1   :  { %2682 = vmatpush1.bf16.msra.mxu1 %v4203_v43 }
 0x2e2   :  { %2683 = vmatprep.subr.bf16.mxu1 %v4208_v56 }
 0x2e5   :  { %2684 = vmatpush1.bf16.msra.mxu1 %v4206_v51 }
 0x2e6   :  { %2685 = vmatprep.subr.bf16.mxu1 %v4211_v53 }
 0x2e9   :  { %2686 = vmatpush1.bf16.msra.mxu1 %v4209_v1 }
 0x2ea   :  { %2687 = vmatprep.subr.bf16.mxu1 %v4214_v25 }
 0x2ed   :  { %2688 = vmatpush1.bf16.msra.mxu1 %v4212_v41 }
 0x2ee   :  { %2689 = vmatprep.subr.bf16.mxu1 %v4217_v7 }
 0x2f1   :  { %2690 = vmatpush1.bf16.msra.mxu1 %v4215_v22 }
 0x2f2   :  { %2757 = vmatprep.subr.bf16.mxu1 %v4220_v46  ;;  %v4259_v46 = vld [vmem:[#allocation14 + $0x80] sm:$0xff]  }
 0x2f4   :  { %2708 = vmatmul.mubr.bf16.vlgmr.msra.gmra.mrb[0].mxu1 %v5617_v0 }
 0x2f5   :  { %2758 = vmatpush1.bf16.msra.mxu1 %v4218_v23  ;;  %2789 = vmatprep.mubr.bf16.mxu1 %v4543_v10  ;;  %v4251_v10 = vld [vmem:[#allocation14 + $0x20] sm:$0xff]   ;;  %v4261_v23 = vld [vmem:[#allocation14 + $0x88] sm:$0xff]  }
 0x2f6   :  { %2759 = vmatprep.subr.bf16.mxu1 %v4223_v60  ;;  %3839 = vmatpush3.bf16.msra.mxu0 %v4251_v10  ;;  %v4262_v60 = vld [vmem:[#allocation14 + $0xd0] sm:$0xff]  }
 0x2f7   :  { %3840 = vmatprep.subr.bf16.mxu0 %v4252_v12  ;;  %v4270_v10 = vld [vmem:[#allocation14 + $0xf0] sm:$0xff]  }
 0x2f9   :  { %2760 = vmatpush1.bf16.msra.mxu1 %v4221_v48  ;;  %v4265_v48 = vld [vmem:[#allocation14 + $0x98] sm:$0xff]  }
 0x2fa   :  { %2761 = vmatprep.subr.bf16.mxu1 %v4226_v38  ;;  %3841 = vmatpush3.bf16.msra.mxu0 %v4253_v49  ;;  %v2816_v38 = vsub.s32 2, %v5629_v36  ;;  %v4271_v49 = vld [vmem:[#allocation14 + $0xb0] sm:$0xff]  }
 0x2fb   :  { %3842 = vmatprep.subr.bf16.mxu0 %v4254_v5 }
 0x2fd   :  { %2762 = vmatpush1.bf16.msra.mxu1 %v4224_v63 }
 0x2fe   :  { %2763 = vmatprep.subr.bf16.mxu1 %v4229_v11  ;;  %3843 = vmatpush3.bf16.msra.mxu0 %v4255_v58  ;;  %v4268_v11 = vld [vmem:[#allocation14 + $0xe8] sm:$0xff]  }
 0x2ff   :  { %3844 = vmatprep.subr.bf16.mxu0 %v4256_v37  ;;  %v4273_v37 = vld [vmem:[#allocation14 + $0xb8] sm:$0xff]  }
 0x301   :  { %2764 = vmatpush1.bf16.msra.mxu1 %v4227_v9 }
 0x302   :  { %2765 = vmatprep.subr.bf16.mxu1 %v4232_v8  ;;  %3845 = vmatpush3.bf16.msra.mxu0 %v4257_v35  ;;  %v2855_v8 = vrot.slane %v5637_v26, %v2816_v38 }
 0x303   :  { %3852 = vmatprep.subr.bf16.mxu0 %v4258_v27  ;;  %v4274_v27 = vld [vmem:[#allocation14 + $0x140] sm:$0xff]  }
 0x305   :  { %2766 = vmatpush1.bf16.msra.mxu1 %v4230_v33 }
 0x306   :  { %2767 = vmatprep.subr.bf16.mxu1 %v4235_v54  ;;  %v2867_v54 = vrot.slane %v5637_v26, %v2828_v34 }
 0x309   :  { %2768 = vmatpush1.bf16.msra.mxu1 %v4233_v28 }
 0x30a   :  { %2769 = vmatprep.subr.bf16.mxu1 %v4238_v62 }
 0x30d   :  { %2770 = vmatpush1.bf16.msra.mxu1 %v4236_v24  ;;  %v4272_v24 = vld [vmem:[#allocation14 + $0xf8] sm:$0xff]  }
 0x30e   :  { %2771 = vmatprep.subr.bf16.mxu1 %v4241_v14 }
 0x311   :  { %2772 = vmatpush1.bf16.msra.mxu1 %v4239_v50 }
 0x314   :  { %2790 = vmatmul.mubr.bf16.vlgmr.msra.gmra.mrb[4].mxu1 %v5617_v0  ;;  %v5632_v0 = vld [vmem:[#allocation11] sm:$0x3f] }
 0x315   :  { %v2821_v42 = vrot.slane %v5632_v0, %v2820_v6  ;;  %v2809_v59 = vrot.slane %v5632_v0, %v2808_v57  ;;  %v2813_v52 = vrot.slane %v5632_v0, %v2812_v39  ;;  %v2817_v63 = vrot.slane %v5632_v0, %v2816_v38  ;;  %v4277_v6 = vld [vmem:[#allocation14 + $0x108] sm:$0xff]   ;;  %v4278_v57 = vld [vmem:[#allocation14 + $0x150] sm:$0xff]   ;;  %v4280_v39 = vld [vmem:[#allocation14 + $0x158] sm:$0xff]  }
 0x316   :  { %v2829_v12 = vrot.slane %v5632_v0, %v2828_v34 }
 0x367   :  { %v2750_v40 = vpop.f32.mrb[4].mxu0 }
 0x368   :  { %v2752_v15 = vpop.f32.mrb[5].mxu0  ;;  %v2838_v9 = vmul.f32 %v2817_v63, %v2750_v40 }
 0x369   :  { %v2754_v55 = vpop.f32.mrb[6].mxu0  ;;  %v2839_v47 = vmul.f32 %v2821_v42, %v2752_v15  ;;  %v4279_v42 = vld [vmem:[#allocation14 + $0x110] sm:$0xff]  }
 0x36a   :  { %v2755_v16 = vpop.f32.mrb[7].mxu0  ;;  %v2876_v28 = vadd.f32 %v2855_v8, %v2838_v9  ;;  %v4275_v55 = vld [vmem:[#allocation14 + $0x100] sm:$0xff]  }
 0x36b   :  { %v2877_v45 = vadd.f32 %v2859_v3, %v2839_v47  ;;  %v2824_v47 = vsub.s32 4, %v5629_v36  ;;  %v4282_v3 = vld [vmem:[#allocation14 + $0x160] sm:$0xff]   ;;  %v4288_v36 = vld [vmem:[#allocation14 + $0x178] sm:$0xff]  }
 0x36c   :  { %v2882_v35 = vmax.f32 %v2876_v28, 0.0 }
 0x36d   :  { %v2883_v41 = vmax.f32 %v2877_v45, 0.0  ;;  %v4286_v45 = vld [vmem:[#allocation14 + $0x170] sm:$0xff]  }
 0x36e   :  { %v2888_v16 = vpack.c.bf16 %v2882_v35, %v2882_v35 }
 0x36f   :  { %v2889_v61 = vpack.c.bf16 %v2883_v41, %v2883_v41 }
 0x3c7   :  { %v2709_v19 = vpop.f32.mrb[0].mxu1 }
 0x3c8   :  { %v2836_v13 = vmul.f32 %v2809_v59, %v2709_v19  ;;  %v2711_v2 = vpop.f32.mrb[1].mxu1  ;;  %v4281_v59 = vld [vmem:[#allocation14 + $0x118] sm:$0xff]   ;;  %v4284_v19 = vld [vmem:[#allocation14 + $0x168] sm:$0xff]  }
 0x3c9   :  { %v2837_v43 = vmul.f32 %v2813_v52, %v2711_v2  ;;  %v2713_v56 = vpop.f32.mrb[2].mxu1  ;;  %v4283_v52 = vld [vmem:[#allocation14 + $0x120] sm:$0xff]   ;;  %v2863_v2 = vrot.slane %v5637_v26, %v2824_v47 }
 0x3ca   :  { %v2874_v51 = vadd.f32 %v2847_v4, %v2836_v13  ;;  %v2714_v53 = vpop.f32.mrb[3].mxu1  ;;  %v2825_v4 = vrot.slane %v5632_v0, %v2824_v47  ;;  %v3619_v26 = vld [vmem:[#allocation16] ss:$0 sm:$0xff] }
 0x3cb   :  { %v2875_v1 = vadd.f32 %v2851_v20, %v2837_v43  ;;  %v4285_v20 = vld [vmem:[#allocation14 + $0x128] sm:$0xff]   ;;  %v4287_v43 = vld [vmem:[#allocation14 + $0x130] sm:$0xff]  }
 0x3cc   :  { %v2880_v25 = vmax.f32 %v2874_v51, 0.0  ;;  %v4289_v51 = vld [vmem:[#allocation14 + $0x138] sm:$0xff]  }
 0x3cd   :  { %v2881_v7 = vmax.f32 %v2875_v1, 0.0 }
 0x3ce   :  { %v2886_v32 = vpack.c.bf16 %v2880_v25, %v2880_v25 }
 0x3cf   :  { %v2887_v22 = vpack.c.bf16 %v2881_v7, %v2881_v7 }
 0x3d1   :  { %3315 = vmatprep.mubr.bf16.mxu0 %v2887_v22 }
 0x3d2   :  { %3316 = vmatmul.mubr.bf16.vlgmr.msra.gmra.mrb[8].mxu0 %v2886_v32 }
 0x3d3   :  { %3853 = vmatpush3.bf16.msra.mxu0 %v4259_v46  ;;  %3355 = vmatprep.mubr.bf16.mxu0 %v2889_v61 }
 0x3d4   :  { %3854 = vmatprep.subr.bf16.mxu0 %v4260_v18 }
 0x3d7   :  { %3855 = vmatpush3.bf16.msra.mxu0 %v4261_v23 }
 0x3d8   :  { %3856 = vmatprep.subr.bf16.mxu0 %v4262_v60 }
 0x3db   :  { %3857 = vmatpush3.bf16.msra.mxu0 %v4263_v17 }
 0x3dc   :  { %3858 = vmatprep.subr.bf16.mxu0 %v4264_v21 }
 0x3df   :  { %3859 = vmatpush3.bf16.msra.mxu0 %v4265_v48 }
 0x3e0   :  { %3860 = vmatprep.subr.bf16.mxu0 %v4266_v29 }
 0x3e3   :  { %3861 = vmatpush3.bf16.msra.mxu0 %v4267_v31 }
 0x3e4   :  { %3862 = vmatprep.subr.bf16.mxu0 %v4268_v11 }
 0x3e7   :  { %3863 = vmatpush3.bf16.msra.mxu0 %v4269_v30  ;;  %v2791_v33 = vpop.f32.mrb[4].mxu1 }
 0x3e8   :  { %v2793_v62 = vpop.f32.mrb[5].mxu1  ;;  %3864 = vmatprep.subr.bf16.mxu0 %v4270_v10  ;;  %v2840_v13 = vmul.f32 %v2825_v4, %v2791_v33 }
 0x3e9   :  { %v2841_v14 = vmul.f32 %v2829_v12, %v2793_v62  ;;  %v2795_v50 = vpop.f32.mrb[6].mxu1 }
 0x3ea   :  { %v2796_v5 = vpop.f32.mrb[7].mxu1  ;;  %v2878_v56 = vadd.f32 %v2863_v2, %v2840_v13 }
 0x3eb   :  { %v2879_v58 = vadd.f32 %v2867_v54, %v2841_v14  ;;  %3865 = vmatpush3.bf16.msra.mxu0 %v4271_v49 }
 0x3ec   :  { %3866 = vmatprep.subr.bf16.mxu0 %v4272_v24  ;;  %v2884_v53 = vmax.f32 %v2878_v56, 0.0 }
 0x3ed   :  { %v2885_v40 = vmax.f32 %v2879_v58, 0.0 }
 0x3ee   :  { %v2890_v0 = vpack.c.bf16 %v2884_v53, %v2884_v53 }
 0x3ef   :  { %v2891_v15 = vpack.c.bf16 %v2885_v40, %v2885_v40  ;;  %3867 = vmatpush3.bf16.msra.mxu0 %v4273_v37 }
 0x3f0   :  { %3874 = vmatprep.subr.bf16.mxu0 %v4274_v27 }
 0x3f2   :  { %3356 = vmatmul.mubr.bf16.vlgmr.msra.gmra.mrb[12].mxu0 %v2888_v16 }
 0x3f3   :  { %3875 = vmatpush3.bf16.msra.mxu0 %v4275_v55  ;;  %3395 = vmatprep.mubr.bf16.mxu0 %v2891_v15 }
 0x3f4   :  { %3876 = vmatprep.subr.bf16.mxu0 %v4276_v44 }
 0x3f7   :  { %3877 = vmatpush3.bf16.msra.mxu0 %v4277_v6 }
 0x3f8   :  { %3878 = vmatprep.subr.bf16.mxu0 %v4278_v57 }
 0x3fb   :  { %3879 = vmatpush3.bf16.msra.mxu0 %v4279_v42 }
 0x3fc   :  { %3880 = vmatprep.subr.bf16.mxu0 %v4280_v39 }
 0x3ff   :  { %3881 = vmatpush3.bf16.msra.mxu0 %v4281_v59 }
 0x400   :  { %3882 = vmatprep.subr.bf16.mxu0 %v4282_v3 }
 0x403   :  { %3883 = vmatpush3.bf16.msra.mxu0 %v4283_v52 }
 0x404   :  { %3884 = vmatprep.subr.bf16.mxu0 %v4284_v19 }
 0x407   :  { %3885 = vmatpush3.bf16.msra.mxu0 %v4285_v20 }
 0x408   :  { %3886 = vmatprep.subr.bf16.mxu0 %v4286_v45 }
 0x40b   :  { %3887 = vmatpush3.bf16.msra.mxu0 %v4287_v43 }
 0x40c   :  { %3888 = vmatprep.subr.bf16.mxu0 %v4288_v36 }
 0x40f   :  { %3889 = vmatpush3.bf16.msra.mxu0 %v4289_v51 }
 0x412   :  { %3396 = vmatmul.mubr.bf16.vlgmr.msra.gmra.mrb[16].mxu0 %v2890_v0 }
 0x4a5   :  { %v3846_v1 = vpop.f32.mrb[8].mxu0 }
 0x4a6   :  { %v3847_v25 = vpop.f32.mrb[9].mxu0 }
 0x4a7   :  { %v3848_v41 = vadd.f32 %v3847_v25, %v3846_v1  ;;  %v3849_v7 = vpop.f32.mrb[10].mxu0 }
 0x4a8   :  { %v3850_v22 = vpop.f32.mrb[11].mxu0 }
 0x4a9   :  { %v3318_v18 = vadd.f32 %v3848_v41, %v3619_v26 }
 0x4c5   :  { %v3868_v46 = vpop.f32.mrb[12].mxu0 }
 0x4c6   :  { %v3869_v32 = vpop.f32.mrb[13].mxu0 }
 0x4c7   :  { %v3870_v61 = vadd.f32 %v3869_v32, %v3868_v46  ;;  %v3871_v23 = vpop.f32.mrb[14].mxu0 }
 0x4c8   :  { %v3872_v60 = vpop.f32.mrb[15].mxu0 }
 0x4c9   :  { %v3358_v17 = vadd.f32 %v3870_v61, %v3318_v18 }
 0x4e5   :  { %v3890_v21 = vpop.f32.mrb[16].mxu0 }
 0x4e6   :  { %v3891_v48 = vpop.f32.mrb[17].mxu0 }
 0x4e7   :  { %v3892_v38 = vadd.f32 %v3891_v48, %v3890_v21  ;;  %v3893_v29 = vpop.f32.mrb[18].mxu0 }
 0x4e8   :  { %v3894_v31 = vpop.f32.mrb[19].mxu0 }
 0x4e9   :  { %v3398_v63 = vadd.f32 %v3892_v38, %v3358_v17 }
 0x4eb   :  { %3403 = vst [vmem:[#allocation17] sm:$0xff] %v3398_v63 }
 0x4ec   :  { %4507 = shalt.err (!%p4504_p6)
}
 0x4ed   :  { %s4508_s24 = scalar_lea.hbm %s5674_s9, 128 }
 0x4ee   :  { %p4509_p7 = scmp.ne.s32.totalorder %s5674_s9, %s4508_s24  ;;  %p4512_p8 = scmp.lt.u32.totalorder %s4508_s24, %s5674_s9 }
 0x4f0   :  { %p4514_p9 = pnand %p4512_p8, %p4509_p7 }
 0x4f2   :  { %4517 = shalt.err (!%p4514_p9)
}
 0x4f3   :  { %3413 = dma.vmem_to_hbm [thread:$0]  %s3411_s2, 128, %s5674_s9, [#allocation4]  }
 0x4f4   :  { %4528 = dma.done.wait [#allocation4], 128  }
 0x4f5   :  { %4529 = vsyncadd [#allocation4], 4294967168 }
 0x4f6   :  { %3417 = vsyncpa [#allocation3], 1 }
 0x4f7   :  { %3418 = vsyncpa [#allocation6], 1 }
 0x4f8   :  { %3419 = vsyncpa [#allocation9], 1 }
 0x4f9   :  { %3420 = vsyncpa [#allocation12], 1 }
 0x4fa   :  { %3421 = vsyncpa [#allocation15], 1 }
 0x4fb   :  { %3422 = vsyncpa [#allocation4], 1 }

</bundles_post_ra>
